<compile_context>
chip_gen: v7x
topology: tpu7x:2x2x1
jax: 0.10.0
libtpu: 0.0.40
codegen_flags: <defaults>
</compile_context>

<pallas_src>
import math

import jax
import jax.numpy as jnp
from jax.experimental import pallas as pl
from jax.experimental.pallas import tpu as pltpu

# --- synthetic mBART-ish config (small) -------------------------------------
D_MODEL = 32
N_HEADS = 2
HEAD_DIM = D_MODEL // N_HEADS
FFN_DIM = 64
VOCAB = 128          # lane-aligned synthetic vocab
MAX_POS = 64
PAD_ID = 1
EOS_ID = 2
NEG_INF = -1e9
LN_EPS = 1e-5

# Fixed ordering of the packed parameter arrays fed to the fused kernel.
_PARAM_NAMES = (
    # encoder
    "enc_ln_emb",
    "enc_sa_wqkv", "enc_sa_bqkv", "enc_sa_wo", "enc_sa_bo", "enc_ln_sa",
    "enc_fc1_w", "enc_fc1_b", "enc_fc2_w", "enc_fc2_b", "enc_ln_ffn",
    "enc_ln_final",
    # decoder
    "dec_ln_emb",
    "dec_sa_wqkv", "dec_sa_bqkv", "dec_sa_wo", "dec_sa_bo", "dec_ln_sa",
    "dec_ca_wq", "dec_ca_bq", "dec_ca_wkv", "dec_ca_bkv", "dec_ca_wo",
    "dec_ca_bo", "dec_ln_ca",
    "dec_fc1_w", "dec_fc1_b", "dec_fc2_w", "dec_fc2_b", "dec_ln_ffn",
    "dec_ln_final",
)


# --------------------------- in-kernel helpers -------------------------------
def _layernorm(x, ln_ref):
    g = ln_ref[0:1, :]                       # (1, D)
    b = ln_ref[1:2, :]                       # (1, D)
    mu = jnp.mean(x, axis=-1, keepdims=True)
    var = jnp.mean((x - mu) * (x - mu), axis=-1, keepdims=True)
    return (x - mu) * jax.lax.rsqrt(var + LN_EPS) * g + b


def _erf(x):
    # Abramowitz & Stegun 7.1.26 (|err| <= 1.5e-7): exact-GELU parity with HF
    # mBART without relying on an erf lowering (only exp/abs/mul/div used).
    p = 0.3275911
    a1, a2, a3, a4, a5 = (0.254829592, -0.284496736, 1.421413741,
                          -1.453152027, 1.061405429)
    sgn = jnp.where(x >= 0.0, 1.0, -1.0)
    ax = jnp.abs(x)
    t = 1.0 / (1.0 + p * ax)
    poly = ((((a5 * t + a4) * t + a3) * t + a2) * t + a1) * t
    return sgn * (1.0 - poly * jnp.exp(-(ax * ax)))


def _gelu_exact(x):
    return 0.5 * x * (1.0 + _erf(x * (1.0 / math.sqrt(2.0))))


def _softmax(s):
    m = jnp.max(s, axis=-1, keepdims=True)
    e = jnp.exp(s - m)
    return e * pl.reciprocal(jnp.sum(e, axis=-1, keepdims=True), approx=True)


def _embed(ids, tok_emb_ref, pos_emb_ref):
    # Embedding gather as a one-hot matmul (MXU), fully in-kernel.
    s = ids.shape[0]
    vocab_iota = jax.lax.broadcasted_iota(jnp.int32, (s, VOCAB), 1)
    onehot = (vocab_iota == ids).astype(jnp.float32)        # (S, VOCAB)
    tok = jnp.dot(onehot, tok_emb_ref[...], preferred_element_type=jnp.float32)
    return tok * math.sqrt(float(D_MODEL)) + pos_emb_ref[...]


def _attend(q, k, v, bias, wo_ref, bo_ref):
    scale = 1.0 / math.sqrt(HEAD_DIM)
    out = bo_ref[...]                                        # (1, D)
    for h in range(N_HEADS):                                 # static unroll
        lo = h * HEAD_DIM
        qh = q[:, lo:lo + HEAD_DIM]
        kh = k[:, lo:lo + HEAD_DIM]
        vh = v[:, lo:lo + HEAD_DIM]
        s = jnp.dot(qh, kh.T, preferred_element_type=jnp.float32) * scale + bias
        pr = _softmax(s)
        ctx = jnp.dot(pr, vh, preferred_element_type=jnp.float32)
        # output projection applied per-head slice of W_o (== concat heads @ W_o)
        out = out + jnp.dot(ctx, wo_ref[lo:lo + HEAD_DIM, :],
                            preferred_element_type=jnp.float32)
    return out


def _self_attention(x, wqkv_ref, bqkv_ref, wo_ref, bo_ref, bias):
    qkv = jnp.dot(x, wqkv_ref[...], preferred_element_type=jnp.float32) + bqkv_ref[...]
    q = qkv[:, 0:D_MODEL]
    k = qkv[:, D_MODEL:2 * D_MODEL]
    v = qkv[:, 2 * D_MODEL:]
    return _attend(q, k, v, bias, wo_ref, bo_ref)


def _cross_attention(x, enc_out, wq_ref, bq_ref, wkv_ref, bkv_ref,
                     wo_ref, bo_ref, bias):
    q = jnp.dot(x, wq_ref[...], preferred_element_type=jnp.float32) + bq_ref[...]
    kv = jnp.dot(enc_out, wkv_ref[...], preferred_element_type=jnp.float32) + bkv_ref[...]
    k = kv[:, 0:D_MODEL]
    v = kv[:, D_MODEL:]
    return _attend(q, k, v, bias, wo_ref, bo_ref)


def _ffn(x, w1_ref, b1_ref, w2_ref, b2_ref):
    h = jnp.dot(x, w1_ref[...], preferred_element_type=jnp.float32) + b1_ref[...]
    h = _gelu_exact(h)
    return jnp.dot(h, w2_ref[...], preferred_element_type=jnp.float32) + b2_ref[...]


# --------------------------- fused forward kernel ----------------------------
def _bartpho_kernel(ids_enc_ref, ids_dec_ref, enc_mask_ref, dec_mask_ref,
                    tok_emb_ref, pos_emb_ref, *refs):
    assert len(refs) == len(_PARAM_NAMES) + 1
    out_ref = refs[-1]
    p = dict(zip(_PARAM_NAMES, refs[:-1]))
    s_len = pos_emb_ref.shape[0]

    # ---- attention biases, generated in-kernel ----
    enc_key_mask = enc_mask_ref[0]                       # (1, S)
    dec_key_mask = dec_mask_ref[0]                       # (1, S)
    enc_bias = (1.0 - enc_key_mask) * NEG_INF            # broadcasts over queries

    row = jax.lax.broadcasted_iota(jnp.int32, (s_len, s_len), 0)
    col = jax.lax.broadcasted_iota(jnp.int32, (s_len, s_len), 1)
    causal = (col <= row).astype(jnp.float32)
    dec_bias = (1.0 - causal * dec_key_mask) * NEG_INF   # (S, S)

    # ---- encoder ----
    x = _embed(ids_enc_ref[...], tok_emb_ref, pos_emb_ref)
    x = _layernorm(x, p["enc_ln_emb"])                   # layernorm_embedding
    h = _layernorm(x, p["enc_ln_sa"])                    # pre-norm self-attn
    x = x + _self_attention(h, p["enc_sa_wqkv"], p["enc_sa_bqkv"],
                            p["enc_sa_wo"], p["enc_sa_bo"], enc_bias)
    h = _layernorm(x, p["enc_ln_ffn"])                   # pre-norm FFN
    x = x + _ffn(h, p["enc_fc1_w"], p["enc_fc1_b"],
                 p["enc_fc2_w"], p["enc_fc2_b"])
    enc_out = _layernorm(x, p["enc_ln_final"])

    # ---- decoder ----
    y = _embed(ids_dec_ref[...], tok_emb_ref, pos_emb_ref)
    y = _layernorm(y, p["dec_ln_emb"])
    h = _layernorm(y, p["dec_ln_sa"])                    # causal self-attn
    y = y + _self_attention(h, p["dec_sa_wqkv"], p["dec_sa_bqkv"],
                            p["dec_sa_wo"], p["dec_sa_bo"], dec_bias)
    h = _layernorm(y, p["dec_ln_ca"])                    # cross-attn
    y = y + _cross_attention(h, enc_out, p["dec_ca_wq"], p["dec_ca_bq"],
                             p["dec_ca_wkv"], p["dec_ca_bkv"],
                             p["dec_ca_wo"], p["dec_ca_bo"], enc_bias)
    h = _layernorm(y, p["dec_ln_ffn"])                   # FFN
    y = y + _ffn(h, p["dec_fc1_w"], p["dec_fc1_b"],
                 p["dec_fc2_w"], p["dec_fc2_b"])
    y = _layernorm(y, p["dec_ln_final"])

    out_ref[...] = y.astype(out_ref.dtype)


# --------------------------- wrapper ------------------------------------------
def bartpho_extractor(params, input_ids, attention_mask):
    """Returns the decoder last_hidden_state [B, S, D_MODEL] (== outputs[0])."""
    B, S = input_ids.shape
    D = D_MODEL

    ids32 = input_ids.astype(jnp.int32)
    ids_enc = ids32.reshape(B * S, 1)

    # TODO(synk): HF mBART shift_tokens_right starts decoding from each
    # sequence's last non-pad token; simplified here to a fixed EOS start token.
    dec_ids = jnp.concatenate(
        [jnp.full((B, 1), EOS_ID, jnp.int32), ids32[:, :-1]], axis=1)
    ids_dec = dec_ids.reshape(B * S, 1)

    enc_mask = attention_mask.astype(jnp.float32).reshape(B, 1, S)
    dec_mask = (dec_ids != PAD_ID).astype(jnp.float32).reshape(B, 1, S)
    pos_emb_s = params["pos_emb"][2:2 + S]               # mBART offset-2 positions

    param_arrays = [params[name] for name in _PARAM_NAMES]

    def full_spec(a):
        nd = a.ndim
        return pl.BlockSpec(a.shape, lambda b, _nd=nd: (0,) * _nd)

    in_specs = [
        pl.BlockSpec((S, 1), lambda b: (b, 0)),          # encoder ids (per batch)
        pl.BlockSpec((S, 1), lambda b: (b, 0)),          # decoder ids (per batch)
        pl.BlockSpec((1, 1, S), lambda b: (b, 0, 0)),    # encoder padding mask
        pl.BlockSpec((1, 1, S), lambda b: (b, 0, 0)),    # decoder padding mask
        pl.BlockSpec((VOCAB, D), lambda b: (0, 0)),      # shared token embedding
        pl.BlockSpec((S, D), lambda b: (0, 0)),          # positional embedding slice
    ] + [full_spec(a) for a in param_arrays]

    out = pl.pallas_call(
        _bartpho_kernel,
        out_shape=jax.ShapeDtypeStruct((B * S, D), jnp.float32),
        grid=(B,),                                       # batch rows are independent
        in_specs=in_specs,
        out_specs=pl.BlockSpec((S, D), lambda b: (b, 0)),
        compiler_params=pltpu.CompilerParams(
            dimension_semantics=("parallel",)),          # 2 TCs on v7x; no-op elsewhere
    )(ids_enc, ids_dec, enc_mask, dec_mask, params["tok_emb"], pos_emb_s,
      *param_arrays)

    return out.reshape(B, S, D)


# --------------------------- parameter init -----------------------------------
def init_params(key):
    keys = iter(jax.random.split(key, 64))

    def w(shape):
        return 0.02 * jax.random.normal(next(keys), shape, jnp.float32)

    def dense(din, dout):
        return w((din, dout)), jnp.zeros((1, dout), jnp.float32)

    def qkv_pack(d):
        wq, bq = dense(d, d)
        wk, bk = dense(d, d)
        wv, bv = dense(d, d)
        return (jnp.concatenate([wq, wk, wv], axis=1),
                jnp.concatenate([bq, bk, bv], axis=1))

    def ln(d):
        return jnp.stack([jnp.ones((d,), jnp.float32),
                          jnp.zeros((d,), jnp.float32)])   # row0 = gamma, row1 = beta

    params = {}
    params["tok_emb"] = w((VOCAB, D_MODEL)).at[PAD_ID].set(0.0)  # padding_idx row = 0
    params["pos_emb"] = w((MAX_POS + 2, D_MODEL))

    # encoder
    params["enc_ln_emb"] = ln(D_MODEL)
    params["enc_sa_wqkv"], params["enc_sa_bqkv"] = qkv_pack(D_MODEL)
    params["enc_sa_wo"], params["enc_sa_bo"] = dense(D_MODEL, D_MODEL)
    params["enc_ln_sa"] = ln(D_MODEL)
    params["enc_fc1_w"], params["enc_fc1_b"] = dense(D_MODEL, FFN_DIM)
    params["enc_fc2_w"], params["enc_fc2_b"] = dense(FFN_DIM, D_MODEL)
    params["enc_ln_ffn"] = ln(D_MODEL)
    params["enc_ln_final"] = ln(D_MODEL)

    # decoder
    params["dec_ln_emb"] = ln(D_MODEL)
    params["dec_sa_wqkv"], params["dec_sa_bqkv"] = qkv_pack(D_MODEL)
    params["dec_sa_wo"], params["dec_sa_bo"] = dense(D_MODEL, D_MODEL)
    params["dec_ln_sa"] = ln(D_MODEL)
    params["dec_ca_wq"], params["dec_ca_bq"] = dense(D_MODEL, D_MODEL)
    wk, bk = dense(D_MODEL, D_MODEL)
    wv, bv = dense(D_MODEL, D_MODEL)
    params["dec_ca_wkv"] = jnp.concatenate([wk, wv], axis=1)
    params["dec_ca_bkv"] = jnp.concatenate([bk, bv], axis=1)
    params["dec_ca_wo"], params["dec_ca_bo"] = dense(D_MODEL, D_MODEL)
    params["dec_ln_ca"] = ln(D_MODEL)
    params["dec_fc1_w"], params["dec_fc1_b"] = dense(D_MODEL, FFN_DIM)
    params["dec_fc2_w"], params["dec_fc2_b"] = dense(FFN_DIM, D_MODEL)
    params["dec_ln_ffn"] = ln(D_MODEL)
    params["dec_ln_final"] = ln(D_MODEL)
    return params


# ------------------------------- main ------------------------------------------
if __name__ == "__main__":
    key = jax.random.PRNGKey(0)
    pkey, ikey = jax.random.split(key)
    params = init_params(pkey)

    B, S = 2, 8
    input_ids = jax.random.randint(ikey, (B, S), 3, VOCAB).astype(jnp.int32)
    attention_mask = jnp.ones((B, S), jnp.int32).at[1, 6:].set(0)
    input_ids = jnp.where(attention_mask == 1, input_ids, PAD_ID)

    features = jax.jit(bartpho_extractor)(params, input_ids, attention_mask)
    jax.block_until_ready(features)
    assert features.shape == (B, S, D_MODEL) and features.dtype == jnp.float32
    print("KERNEL_OK")
</pallas_src>

<mosaic_0001>
module attributes {stable_mosaic.version = 11 : i64} {
  func.func @_bartpho_kernel(%arg0: i32, %arg1: memref<8x1xi32, #tpu.memory_space<vmem>>, %arg2: memref<8x1xi32, #tpu.memory_space<vmem>>, %arg3: memref<1x1x8xf32, #tpu.memory_space<vmem>>, %arg4: memref<1x1x8xf32, #tpu.memory_space<vmem>>, %arg5: memref<128x32xf32, #tpu.memory_space<vmem>>, %arg6: memref<8x32xf32, #tpu.memory_space<vmem>>, %arg7: memref<2x32xf32, #tpu.memory_space<vmem>>, %arg8: memref<32x96xf32, #tpu.memory_space<vmem>>, %arg9: memref<1x96xf32, #tpu.memory_space<vmem>>, %arg10: memref<32x32xf32, #tpu.memory_space<vmem>>, %arg11: memref<1x32xf32, #tpu.memory_space<vmem>>, %arg12: memref<2x32xf32, #tpu.memory_space<vmem>>, %arg13: memref<32x64xf32, #tpu.memory_space<vmem>>, %arg14: memref<1x64xf32, #tpu.memory_space<vmem>>, %arg15: memref<64x32xf32, #tpu.memory_space<vmem>>, %arg16: memref<1x32xf32, #tpu.memory_space<vmem>>, %arg17: memref<2x32xf32, #tpu.memory_space<vmem>>, %arg18: memref<2x32xf32, #tpu.memory_space<vmem>>, %arg19: memref<2x32xf32, #tpu.memory_space<vmem>>, %arg20: memref<32x96xf32, #tpu.memory_space<vmem>>, %arg21: memref<1x96xf32, #tpu.memory_space<vmem>>, %arg22: memref<32x32xf32, #tpu.memory_space<vmem>>, %arg23: memref<1x32xf32, #tpu.memory_space<vmem>>, %arg24: memref<2x32xf32, #tpu.memory_space<vmem>>, %arg25: memref<32x32xf32, #tpu.memory_space<vmem>>, %arg26: memref<1x32xf32, #tpu.memory_space<vmem>>, %arg27: memref<32x64xf32, #tpu.memory_space<vmem>>, %arg28: memref<1x64xf32, #tpu.memory_space<vmem>>, %arg29: memref<32x32xf32, #tpu.memory_space<vmem>>, %arg30: memref<1x32xf32, #tpu.memory_space<vmem>>, %arg31: memref<2x32xf32, #tpu.memory_space<vmem>>, %arg32: memref<32x64xf32, #tpu.memory_space<vmem>>, %arg33: memref<1x64xf32, #tpu.memory_space<vmem>>, %arg34: memref<64x32xf32, #tpu.memory_space<vmem>>, %arg35: memref<1x32xf32, #tpu.memory_space<vmem>>, %arg36: memref<2x32xf32, #tpu.memory_space<vmem>>, %arg37: memref<2x32xf32, #tpu.memory_space<vmem>>, %arg38: memref<8x32xf32, #tpu.memory_space<vmem>>) attributes {dimension_semantics = [#tpu.dimension_semantics<parallel>], iteration_bounds = array<i64: 2>, scalar_prefetch = 0 : i64, scratch_operands = 0 : i64, tpu.core_type = #tpu.core_type<tc>, window_params = [{transform_indices = @transform_0, window_bounds = array<i64: 8, 1>}, {transform_indices = @transform_1, window_bounds = array<i64: 8, 1>}, {transform_indices = @transform_2, window_bounds = array<i64: 1, 1, 8>}, {transform_indices = @transform_3, window_bounds = array<i64: 1, 1, 8>}, {pipeline_mode = #tpu.pipeline_mode<synchronous>, transform_indices = @transform_4, window_bounds = array<i64: 128, 32>}, {pipeline_mode = #tpu.pipeline_mode<synchronous>, transform_indices = @transform_5, window_bounds = array<i64: 8, 32>}, {pipeline_mode = #tpu.pipeline_mode<synchronous>, transform_indices = @transform_6, window_bounds = array<i64: 2, 32>}, {pipeline_mode = #tpu.pipeline_mode<synchronous>, transform_indices = @transform_7, window_bounds = array<i64: 32, 96>}, {pipeline_mode = #tpu.pipeline_mode<synchronous>, transform_indices = @transform_8, window_bounds = array<i64: 1, 96>}, {pipeline_mode = #tpu.pipeline_mode<synchronous>, transform_indices = @transform_9, window_bounds = array<i64: 32, 32>}, {pipeline_mode = #tpu.pipeline_mode<synchronous>, transform_indices = @transform_10, window_bounds = array<i64: 1, 32>}, {pipeline_mode = #tpu.pipeline_mode<synchronous>, transform_indices = @transform_11, window_bounds = array<i64: 2, 32>}, {pipeline_mode = #tpu.pipeline_mode<synchronous>, transform_indices = @transform_12, window_bounds = array<i64: 32, 64>}, {pipeline_mode = #tpu.pipeline_mode<synchronous>, transform_indices = @transform_13, window_bounds = array<i64: 1, 64>}, {pipeline_mode = #tpu.pipeline_mode<synchronous>, transform_indices = @transform_14, window_bounds = array<i64: 64, 32>}, {pipeline_mode = #tpu.pipeline_mode<synchronous>, transform_indices = @transform_15, window_bounds = array<i64: 1, 32>}, {pipeline_mode = #tpu.pipeline_mode<synchronous>, transform_indices = @transform_16, window_bounds = array<i64: 2, 32>}, {pipeline_mode = #tpu.pipeline_mode<synchronous>, transform_indices = @transform_17, window_bounds = array<i64: 2, 32>}, {pipeline_mode = #tpu.pipeline_mode<synchronous>, transform_indices = @transform_18, window_bounds = array<i64: 2, 32>}, {pipeline_mode = #tpu.pipeline_mode<synchronous>, transform_indices = @transform_19, window_bounds = array<i64: 32, 96>}, {pipeline_mode = #tpu.pipeline_mode<synchronous>, transform_indices = @transform_20, window_bounds = array<i64: 1, 96>}, {pipeline_mode = #tpu.pipeline_mode<synchronous>, transform_indices = @transform_21, window_bounds = array<i64: 32, 32>}, {pipeline_mode = #tpu.pipeline_mode<synchronous>, transform_indices = @transform_22, window_bounds = array<i64: 1, 32>}, {pipeline_mode = #tpu.pipeline_mode<synchronous>, transform_indices = @transform_23, window_bounds = array<i64: 2, 32>}, {pipeline_mode = #tpu.pipeline_mode<synchronous>, transform_indices = @transform_24, window_bounds = array<i64: 32, 32>}, {pipeline_mode = #tpu.pipeline_mode<synchronous>, transform_indices = @transform_25, window_bounds = array<i64: 1, 32>}, {pipeline_mode = #tpu.pipeline_mode<synchronous>, transform_indices = @transform_26, window_bounds = array<i64: 32, 64>}, {pipeline_mode = #tpu.pipeline_mode<synchronous>, transform_indices = @transform_27, window_bounds = array<i64: 1, 64>}, {pipeline_mode = #tpu.pipeline_mode<synchronous>, transform_indices = @transform_28, window_bounds = array<i64: 32, 32>}, {pipeline_mode = #tpu.pipeline_mode<synchronous>, transform_indices = @transform_29, window_bounds = array<i64: 1, 32>}, {pipeline_mode = #tpu.pipeline_mode<synchronous>, transform_indices = @transform_30, window_bounds = array<i64: 2, 32>}, {pipeline_mode = #tpu.pipeline_mode<synchronous>, transform_indices = @transform_31, window_bounds = array<i64: 32, 64>}, {pipeline_mode = #tpu.pipeline_mode<synchronous>, transform_indices = @transform_32, window_bounds = array<i64: 1, 64>}, {pipeline_mode = #tpu.pipeline_mode<synchronous>, transform_indices = @transform_33, window_bounds = array<i64: 64, 32>}, {pipeline_mode = #tpu.pipeline_mode<synchronous>, transform_indices = @transform_34, window_bounds = array<i64: 1, 32>}, {pipeline_mode = #tpu.pipeline_mode<synchronous>, transform_indices = @transform_35, window_bounds = array<i64: 2, 32>}, {pipeline_mode = #tpu.pipeline_mode<synchronous>, transform_indices = @transform_36, window_bounds = array<i64: 2, 32>}, {transform_indices = @transform_37, window_bounds = array<i64: 8, 32>}]} {
    %c0 = arith.constant 0 : index
    %c0_0 = arith.constant 0 : index
    %c0_1 = arith.constant 0 : index
    %0 = vector.load %arg3[%c0, %c0_0, %c0_1] : memref<1x1x8xf32, #tpu.memory_space<vmem>>, vector<1x1x8xf32>
    %1 = vector.shape_cast %0 : vector<1x1x8xf32> to vector<1x8xf32>
    %c0_2 = arith.constant 0 : index
    %c0_3 = arith.constant 0 : index
    %c0_4 = arith.constant 0 : index
    %2 = vector.load %arg4[%c0_2, %c0_3, %c0_4] : memref<1x1x8xf32, #tpu.memory_space<vmem>>, vector<1x1x8xf32>
    %3 = vector.shape_cast %2 : vector<1x1x8xf32> to vector<1x8xf32>
    %cst = arith.constant 1.000000e+00 : f32
    %4 = vector.broadcast %cst : f32 to vector<1x8xf32>
    %5 = arith.subf %4, %1 : vector<1x8xf32>
    %cst_5 = arith.constant -1.000000e+09 : f32
    %6 = vector.broadcast %cst_5 : f32 to vector<1x8xf32>
    %7 = arith.mulf %5, %6 : vector<1x8xf32>
    %8 = tpu.iota {dimensions = array<i32: 0>} : vector<8x8xi32>
    %9 = tpu.iota {dimensions = array<i32: 1>} : vector<8x8xi32>
    %10 = arith.cmpi sle, %9, %8 : vector<8x8xi32>
    %11 = arith.extui %10 : vector<8x8xi1> to vector<8x8xi32>
    %12 = arith.sitofp %11 : vector<8x8xi32> to vector<8x8xf32>
    %13 = vector.broadcast %3 : vector<1x8xf32> to vector<8x8xf32>
    %14 = arith.mulf %12, %13 : vector<8x8xf32>
    %cst_6 = arith.constant 1.000000e+00 : f32
    %15 = vector.broadcast %cst_6 : f32 to vector<8x8xf32>
    %16 = arith.subf %15, %14 : vector<8x8xf32>
    %cst_7 = arith.constant -1.000000e+09 : f32
    %17 = vector.broadcast %cst_7 : f32 to vector<8x8xf32>
    %18 = arith.mulf %16, %17 : vector<8x8xf32>
    %c0_8 = arith.constant 0 : index
    %c0_9 = arith.constant 0 : index
    %19 = vector.load %arg1[%c0_8, %c0_9] : memref<8x1xi32, #tpu.memory_space<vmem>>, vector<8x1xi32>
    %20 = tpu.iota {dimensions = array<i32: 1>} : vector<8x128xi32>
    %21 = vector.broadcast %19 : vector<8x1xi32> to vector<8x128xi32>
    %22 = arith.cmpi eq, %20, %21 : vector<8x128xi32>
    %23 = arith.extui %22 : vector<8x128xi1> to vector<8x128xi32>
    %24 = arith.sitofp %23 : vector<8x128xi32> to vector<8x128xf32>
    %c0_10 = arith.constant 0 : index
    %c0_11 = arith.constant 0 : index
    %25 = vector.load %arg5[%c0_10, %c0_11] : memref<128x32xf32, #tpu.memory_space<vmem>>, vector<128x32xf32>
    %cst_12 = arith.constant dense<0.000000e+00> : vector<8x32xf32>
    %26 = tpu.matmul %24, %25, %cst_12 {dimension_numbers = #tpu.dot_dimension_numbers<[1], [0], [0], [1], [0, 0, 1, 1], [], []>} : vector<8x128xf32>, vector<128x32xf32>, vector<8x32xf32> -> vector<8x32xf32>
    %cst_13 = arith.constant 5.65685415 : f32
    %27 = vector.broadcast %cst_13 : f32 to vector<8x32xf32>
    %28 = arith.mulf %26, %27 : vector<8x32xf32>
    %c0_14 = arith.constant 0 : index
    %c0_15 = arith.constant 0 : index
    %29 = vector.load %arg6[%c0_14, %c0_15] : memref<8x32xf32, #tpu.memory_space<vmem>>, vector<8x32xf32>
    %30 = arith.addf %28, %29 : vector<8x32xf32>
    %c0_16 = arith.constant 0 : index
    %c0_17 = arith.constant 0 : index
    %31 = vector.load %arg7[%c0_16, %c0_17] : memref<2x32xf32, #tpu.memory_space<vmem>>, vector<1x32xf32>
    %c1 = arith.constant 1 : index
    %c0_18 = arith.constant 0 : index
    %32 = vector.load %arg7[%c1, %c0_18] : memref<2x32xf32, #tpu.memory_space<vmem>>, vector<1x32xf32>
    %cst_19 = arith.constant dense<0.000000e+00> : vector<8xf32>
    %33 = vector.multi_reduction <add>, %30, %cst_19 [1] : vector<8x32xf32> to vector<8xf32>
    %34 = vector.shape_cast %33 : vector<8xf32> to vector<8x1xf32>
    %cst_20 = arith.constant 3.200000e+01 : f32
    %35 = vector.broadcast %cst_20 : f32 to vector<8x1xf32>
    %36 = arith.divf %34, %35 : vector<8x1xf32>
    %37 = vector.broadcast %36 : vector<8x1xf32> to vector<8x32xf32>
    %38 = arith.subf %30, %37 : vector<8x32xf32>
    %39 = vector.broadcast %36 : vector<8x1xf32> to vector<8x32xf32>
    %40 = arith.subf %30, %39 : vector<8x32xf32>
    %41 = arith.mulf %38, %40 : vector<8x32xf32>
    %cst_21 = arith.constant dense<0.000000e+00> : vector<8xf32>
    %42 = vector.multi_reduction <add>, %41, %cst_21 [1] : vector<8x32xf32> to vector<8xf32>
    %43 = vector.shape_cast %42 : vector<8xf32> to vector<8x1xf32>
    %cst_22 = arith.constant 3.200000e+01 : f32
    %44 = vector.broadcast %cst_22 : f32 to vector<8x1xf32>
    %45 = arith.divf %43, %44 : vector<8x1xf32>
    %46 = vector.broadcast %36 : vector<8x1xf32> to vector<8x32xf32>
    %47 = arith.subf %30, %46 : vector<8x32xf32>
    %cst_23 = arith.constant 9.99999974E-6 : f32
    %48 = vector.broadcast %cst_23 : f32 to vector<8x1xf32>
    %49 = arith.addf %45, %48 : vector<8x1xf32>
    %50 = math.rsqrt %49 : vector<8x1xf32>
    %51 = vector.broadcast %50 : vector<8x1xf32> to vector<8x32xf32>
    %52 = arith.mulf %47, %51 : vector<8x32xf32>
    %53 = vector.broadcast %31 : vector<1x32xf32> to vector<8x32xf32>
    %54 = arith.mulf %52, %53 : vector<8x32xf32>
    %55 = vector.broadcast %32 : vector<1x32xf32> to vector<8x32xf32>
    %56 = arith.addf %54, %55 : vector<8x32xf32>
    %c0_24 = arith.constant 0 : index
    %c0_25 = arith.constant 0 : index
    %57 = vector.load %arg12[%c0_24, %c0_25] : memref<2x32xf32, #tpu.memory_space<vmem>>, vector<1x32xf32>
    %c1_26 = arith.constant 1 : index
    %c0_27 = arith.constant 0 : index
    %58 = vector.load %arg12[%c1_26, %c0_27] : memref<2x32xf32, #tpu.memory_space<vmem>>, vector<1x32xf32>
    %cst_28 = arith.constant dense<0.000000e+00> : vector<8xf32>
    %59 = vector.multi_reduction <add>, %56, %cst_28 [1] : vector<8x32xf32> to vector<8xf32>
    %60 = vector.shape_cast %59 : vector<8xf32> to vector<8x1xf32>
    %cst_29 = arith.constant 3.200000e+01 : f32
    %61 = vector.broadcast %cst_29 : f32 to vector<8x1xf32>
    %62 = arith.divf %60, %61 : vector<8x1xf32>
    %63 = vector.broadcast %62 : vector<8x1xf32> to vector<8x32xf32>
    %64 = arith.subf %56, %63 : vector<8x32xf32>
    %65 = vector.broadcast %62 : vector<8x1xf32> to vector<8x32xf32>
    %66 = arith.subf %56, %65 : vector<8x32xf32>
    %67 = arith.mulf %64, %66 : vector<8x32xf32>
    %cst_30 = arith.constant dense<0.000000e+00> : vector<8xf32>
    %68 = vector.multi_reduction <add>, %67, %cst_30 [1] : vector<8x32xf32> to vector<8xf32>
    %69 = vector.shape_cast %68 : vector<8xf32> to vector<8x1xf32>
    %cst_31 = arith.constant 3.200000e+01 : f32
    %70 = vector.broadcast %cst_31 : f32 to vector<8x1xf32>
    %71 = arith.divf %69, %70 : vector<8x1xf32>
    %72 = vector.broadcast %62 : vector<8x1xf32> to vector<8x32xf32>
    %73 = arith.subf %56, %72 : vector<8x32xf32>
    %cst_32 = arith.constant 9.99999974E-6 : f32
    %74 = vector.broadcast %cst_32 : f32 to vector<8x1xf32>
    %75 = arith.addf %71, %74 : vector<8x1xf32>
    %76 = math.rsqrt %75 : vector<8x1xf32>
    %77 = vector.broadcast %76 : vector<8x1xf32> to vector<8x32xf32>
    %78 = arith.mulf %73, %77 : vector<8x32xf32>
    %79 = vector.broadcast %57 : vector<1x32xf32> to vector<8x32xf32>
    %80 = arith.mulf %78, %79 : vector<8x32xf32>
    %81 = vector.broadcast %58 : vector<1x32xf32> to vector<8x32xf32>
    %82 = arith.addf %80, %81 : vector<8x32xf32>
    %c0_33 = arith.constant 0 : index
    %c0_34 = arith.constant 0 : index
    %83 = vector.load %arg8[%c0_33, %c0_34] : memref<32x96xf32, #tpu.memory_space<vmem>>, vector<32x96xf32>
    %cst_35 = arith.constant dense<0.000000e+00> : vector<8x96xf32>
    %84 = tpu.matmul %82, %83, %cst_35 {dimension_numbers = #tpu.dot_dimension_numbers<[1], [0], [0], [1], [0, 0, 1, 1], [], []>} : vector<8x32xf32>, vector<32x96xf32>, vector<8x96xf32> -> vector<8x96xf32>
    %c0_36 = arith.constant 0 : index
    %c0_37 = arith.constant 0 : index
    %85 = vector.load %arg9[%c0_36, %c0_37] : memref<1x96xf32, #tpu.memory_space<vmem>>, vector<1x96xf32>
    %86 = vector.broadcast %85 : vector<1x96xf32> to vector<8x96xf32>
    %87 = arith.addf %84, %86 : vector<8x96xf32>
    %88 = vector.extract_strided_slice %87 {offsets = [0, 0], sizes = [8, 32], strides = [1, 1]} : vector<8x96xf32> to vector<8x32xf32>
    %89 = vector.extract_strided_slice %87 {offsets = [0, 32], sizes = [8, 32], strides = [1, 1]} : vector<8x96xf32> to vector<8x32xf32>
    %90 = vector.extract_strided_slice %87 {offsets = [0, 64], sizes = [8, 32], strides = [1, 1]} : vector<8x96xf32> to vector<8x32xf32>
    %c0_38 = arith.constant 0 : index
    %c0_39 = arith.constant 0 : index
    %91 = vector.load %arg11[%c0_38, %c0_39] : memref<1x32xf32, #tpu.memory_space<vmem>>, vector<1x32xf32>
    %92 = vector.extract_strided_slice %88 {offsets = [0, 0], sizes = [8, 16], strides = [1, 1]} : vector<8x32xf32> to vector<8x16xf32>
    %93 = vector.extract_strided_slice %89 {offsets = [0, 0], sizes = [8, 16], strides = [1, 1]} : vector<8x32xf32> to vector<8x16xf32>
    %94 = vector.extract_strided_slice %90 {offsets = [0, 0], sizes = [8, 16], strides = [1, 1]} : vector<8x32xf32> to vector<8x16xf32>
    %95 = tpu.transpose %93, [1, 0] : vector<8x16xf32> -> vector<16x8xf32>
    %cst_40 = arith.constant dense<0.000000e+00> : vector<8x8xf32>
    %96 = tpu.matmul %92, %95, %cst_40 {dimension_numbers = #tpu.dot_dimension_numbers<[1], [0], [0], [1], [0, 0, 1, 1], [], []>} : vector<8x16xf32>, vector<16x8xf32>, vector<8x8xf32> -> vector<8x8xf32>
    %cst_41 = arith.constant 2.500000e-01 : f32
    %97 = vector.broadcast %cst_41 : f32 to vector<8x8xf32>
    %98 = arith.mulf %96, %97 : vector<8x8xf32>
    %99 = vector.broadcast %7 : vector<1x8xf32> to vector<8x8xf32>
    %100 = arith.addf %98, %99 : vector<8x8xf32>
    %cst_42 = arith.constant dense<0xFF800000> : vector<8xf32>
    %101 = vector.multi_reduction <maximumf>, %100, %cst_42 [1] : vector<8x8xf32> to vector<8xf32>
    %102 = vector.shape_cast %101 : vector<8xf32> to vector<8x1xf32>
    %103 = vector.broadcast %102 : vector<8x1xf32> to vector<8x8xf32>
    %104 = arith.subf %100, %103 : vector<8x8xf32>
    %105 = math.exp %104 : vector<8x8xf32>
    %cst_43 = arith.constant dense<0.000000e+00> : vector<8xf32>
    %106 = vector.multi_reduction <add>, %105, %cst_43 [1] : vector<8x8xf32> to vector<8xf32>
    %107 = vector.shape_cast %106 : vector<8xf32> to vector<8x1xf32>
    %108 = tpu.reciprocal %107 {approx = true} : vector<8x1xf32> -> vector<8x1xf32>
    %109 = vector.broadcast %108 : vector<8x1xf32> to vector<8x8xf32>
    %110 = arith.mulf %105, %109 : vector<8x8xf32>
    %cst_44 = arith.constant dense<0.000000e+00> : vector<8x16xf32>
    %111 = tpu.matmul %110, %94, %cst_44 {dimension_numbers = #tpu.dot_dimension_numbers<[1], [0], [0], [1], [0, 0, 1, 1], [], []>} : vector<8x8xf32>, vector<8x16xf32>, vector<8x16xf32> -> vector<8x16xf32>
    %c0_45 = arith.constant 0 : index
    %c0_46 = arith.constant 0 : index
    %112 = vector.load %arg10[%c0_45, %c0_46] : memref<32x32xf32, #tpu.memory_space<vmem>>, vector<16x32xf32>
    %cst_47 = arith.constant dense<0.000000e+00> : vector<8x32xf32>
    %113 = tpu.matmul %111, %112, %cst_47 {dimension_numbers = #tpu.dot_dimension_numbers<[1], [0], [0], [1], [0, 0, 1, 1], [], []>} : vector<8x16xf32>, vector<16x32xf32>, vector<8x32xf32> -> vector<8x32xf32>
    %114 = vector.broadcast %91 : vector<1x32xf32> to vector<8x32xf32>
    %115 = arith.addf %114, %113 : vector<8x32xf32>
    %116 = vector.extract_strided_slice %88 {offsets = [0, 16], sizes = [8, 16], strides = [1, 1]} : vector<8x32xf32> to vector<8x16xf32>
    %117 = vector.extract_strided_slice %89 {offsets = [0, 16], sizes = [8, 16], strides = [1, 1]} : vector<8x32xf32> to vector<8x16xf32>
    %118 = vector.extract_strided_slice %90 {offsets = [0, 16], sizes = [8, 16], strides = [1, 1]} : vector<8x32xf32> to vector<8x16xf32>
    %119 = tpu.transpose %117, [1, 0] : vector<8x16xf32> -> vector<16x8xf32>
    %cst_48 = arith.constant dense<0.000000e+00> : vector<8x8xf32>
    %120 = tpu.matmul %116, %119, %cst_48 {dimension_numbers = #tpu.dot_dimension_numbers<[1], [0], [0], [1], [0, 0, 1, 1], [], []>} : vector<8x16xf32>, vector<16x8xf32>, vector<8x8xf32> -> vector<8x8xf32>
    %cst_49 = arith.constant 2.500000e-01 : f32
    %121 = vector.broadcast %cst_49 : f32 to vector<8x8xf32>
    %122 = arith.mulf %120, %121 : vector<8x8xf32>
    %123 = vector.broadcast %7 : vector<1x8xf32> to vector<8x8xf32>
    %124 = arith.addf %122, %123 : vector<8x8xf32>
    %cst_50 = arith.constant dense<0xFF800000> : vector<8xf32>
    %125 = vector.multi_reduction <maximumf>, %124, %cst_50 [1] : vector<8x8xf32> to vector<8xf32>
    %126 = vector.shape_cast %125 : vector<8xf32> to vector<8x1xf32>
    %127 = vector.broadcast %126 : vector<8x1xf32> to vector<8x8xf32>
    %128 = arith.subf %124, %127 : vector<8x8xf32>
    %129 = math.exp %128 : vector<8x8xf32>
    %cst_51 = arith.constant dense<0.000000e+00> : vector<8xf32>
    %130 = vector.multi_reduction <add>, %129, %cst_51 [1] : vector<8x8xf32> to vector<8xf32>
    %131 = vector.shape_cast %130 : vector<8xf32> to vector<8x1xf32>
    %132 = tpu.reciprocal %131 {approx = true} : vector<8x1xf32> -> vector<8x1xf32>
    %133 = vector.broadcast %132 : vector<8x1xf32> to vector<8x8xf32>
    %134 = arith.mulf %129, %133 : vector<8x8xf32>
    %cst_52 = arith.constant dense<0.000000e+00> : vector<8x16xf32>
    %135 = tpu.matmul %134, %118, %cst_52 {dimension_numbers = #tpu.dot_dimension_numbers<[1], [0], [0], [1], [0, 0, 1, 1], [], []>} : vector<8x8xf32>, vector<8x16xf32>, vector<8x16xf32> -> vector<8x16xf32>
    %c16 = arith.constant 16 : index
    %c0_53 = arith.constant 0 : index
    %136 = vector.load %arg10[%c16, %c0_53] : memref<32x32xf32, #tpu.memory_space<vmem>>, vector<16x32xf32>
    %cst_54 = arith.constant dense<0.000000e+00> : vector<8x32xf32>
    %137 = tpu.matmul %135, %136, %cst_54 {dimension_numbers = #tpu.dot_dimension_numbers<[1], [0], [0], [1], [0, 0, 1, 1], [], []>} : vector<8x16xf32>, vector<16x32xf32>, vector<8x32xf32> -> vector<8x32xf32>
    %138 = arith.addf %115, %137 : vector<8x32xf32>
    %139 = arith.addf %56, %138 : vector<8x32xf32>
    %c0_55 = arith.constant 0 : index
    %c0_56 = arith.constant 0 : index
    %140 = vector.load %arg17[%c0_55, %c0_56] : memref<2x32xf32, #tpu.memory_space<vmem>>, vector<1x32xf32>
    %c1_57 = arith.constant 1 : index
    %c0_58 = arith.constant 0 : index
    %141 = vector.load %arg17[%c1_57, %c0_58] : memref<2x32xf32, #tpu.memory_space<vmem>>, vector<1x32xf32>
    %cst_59 = arith.constant dense<0.000000e+00> : vector<8xf32>
    %142 = vector.multi_reduction <add>, %139, %cst_59 [1] : vector<8x32xf32> to vector<8xf32>
    %143 = vector.shape_cast %142 : vector<8xf32> to vector<8x1xf32>
    %cst_60 = arith.constant 3.200000e+01 : f32
    %144 = vector.broadcast %cst_60 : f32 to vector<8x1xf32>
    %145 = arith.divf %143, %144 : vector<8x1xf32>
    %146 = vector.broadcast %145 : vector<8x1xf32> to vector<8x32xf32>
    %147 = arith.subf %139, %146 : vector<8x32xf32>
    %148 = vector.broadcast %145 : vector<8x1xf32> to vector<8x32xf32>
    %149 = arith.subf %139, %148 : vector<8x32xf32>
    %150 = arith.mulf %147, %149 : vector<8x32xf32>
    %cst_61 = arith.constant dense<0.000000e+00> : vector<8xf32>
    %151 = vector.multi_reduction <add>, %150, %cst_61 [1] : vector<8x32xf32> to vector<8xf32>
    %152 = vector.shape_cast %151 : vector<8xf32> to vector<8x1xf32>
    %cst_62 = arith.constant 3.200000e+01 : f32
    %153 = vector.broadcast %cst_62 : f32 to vector<8x1xf32>
    %154 = arith.divf %152, %153 : vector<8x1xf32>
    %155 = vector.broadcast %145 : vector<8x1xf32> to vector<8x32xf32>
    %156 = arith.subf %139, %155 : vector<8x32xf32>
    %cst_63 = arith.constant 9.99999974E-6 : f32
    %157 = vector.broadcast %cst_63 : f32 to vector<8x1xf32>
    %158 = arith.addf %154, %157 : vector<8x1xf32>
    %159 = math.rsqrt %158 : vector<8x1xf32>
    %160 = vector.broadcast %159 : vector<8x1xf32> to vector<8x32xf32>
    %161 = arith.mulf %156, %160 : vector<8x32xf32>
    %162 = vector.broadcast %140 : vector<1x32xf32> to vector<8x32xf32>
    %163 = arith.mulf %161, %162 : vector<8x32xf32>
    %164 = vector.broadcast %141 : vector<1x32xf32> to vector<8x32xf32>
    %165 = arith.addf %163, %164 : vector<8x32xf32>
    %c0_64 = arith.constant 0 : index
    %c0_65 = arith.constant 0 : index
    %166 = vector.load %arg13[%c0_64, %c0_65] : memref<32x64xf32, #tpu.memory_space<vmem>>, vector<32x64xf32>
    %cst_66 = arith.constant dense<0.000000e+00> : vector<8x64xf32>
    %167 = tpu.matmul %165, %166, %cst_66 {dimension_numbers = #tpu.dot_dimension_numbers<[1], [0], [0], [1], [0, 0, 1, 1], [], []>} : vector<8x32xf32>, vector<32x64xf32>, vector<8x64xf32> -> vector<8x64xf32>
    %c0_67 = arith.constant 0 : index
    %c0_68 = arith.constant 0 : index
    %168 = vector.load %arg14[%c0_67, %c0_68] : memref<1x64xf32, #tpu.memory_space<vmem>>, vector<1x64xf32>
    %169 = vector.broadcast %168 : vector<1x64xf32> to vector<8x64xf32>
    %170 = arith.addf %167, %169 : vector<8x64xf32>
    %cst_69 = arith.constant 5.000000e-01 : f32
    %171 = vector.broadcast %cst_69 : f32 to vector<8x64xf32>
    %172 = arith.mulf %171, %170 : vector<8x64xf32>
    %cst_70 = arith.constant 0.707106769 : f32
    %173 = vector.broadcast %cst_70 : f32 to vector<8x64xf32>
    %174 = arith.mulf %170, %173 : vector<8x64xf32>
    %cst_71 = arith.constant 0.000000e+00 : f32
    %175 = vector.broadcast %cst_71 : f32 to vector<8x64xf32>
    %176 = arith.cmpf oge, %174, %175 : vector<8x64xf32>
    %cst_72 = arith.constant 1.000000e+00 : f32
    %cst_73 = arith.constant -1.000000e+00 : f32
    %177 = vector.broadcast %cst_72 : f32 to vector<8x64xf32>
    %178 = vector.broadcast %cst_73 : f32 to vector<8x64xf32>
    %179 = arith.select %176, %177, %178 : vector<8x64xi1>, vector<8x64xf32>
    %180 = math.absf %174 : vector<8x64xf32>
    %cst_74 = arith.constant 0.327591091 : f32
    %181 = vector.broadcast %cst_74 : f32 to vector<8x64xf32>
    %182 = arith.mulf %181, %180 : vector<8x64xf32>
    %cst_75 = arith.constant 1.000000e+00 : f32
    %183 = vector.broadcast %cst_75 : f32 to vector<8x64xf32>
    %184 = arith.addf %183, %182 : vector<8x64xf32>
    %cst_76 = arith.constant 1.000000e+00 : f32
    %185 = vector.broadcast %cst_76 : f32 to vector<8x64xf32>
    %186 = arith.divf %185, %184 : vector<8x64xf32>
    %cst_77 = arith.constant 1.06140542 : f32
    %187 = vector.broadcast %cst_77 : f32 to vector<8x64xf32>
    %188 = arith.mulf %187, %186 : vector<8x64xf32>
    %cst_78 = arith.constant -1.45315206 : f32
    %189 = vector.broadcast %cst_78 : f32 to vector<8x64xf32>
    %190 = arith.addf %188, %189 : vector<8x64xf32>
    %191 = arith.mulf %190, %186 : vector<8x64xf32>
    %cst_79 = arith.constant 1.42141378 : f32
    %192 = vector.broadcast %cst_79 : f32 to vector<8x64xf32>
    %193 = arith.addf %191, %192 : vector<8x64xf32>
    %194 = arith.mulf %193, %186 : vector<8x64xf32>
    %cst_80 = arith.constant -0.284496725 : f32
    %195 = vector.broadcast %cst_80 : f32 to vector<8x64xf32>
    %196 = arith.addf %194, %195 : vector<8x64xf32>
    %197 = arith.mulf %196, %186 : vector<8x64xf32>
    %cst_81 = arith.constant 0.254829586 : f32
    %198 = vector.broadcast %cst_81 : f32 to vector<8x64xf32>
    %199 = arith.addf %197, %198 : vector<8x64xf32>
    %200 = arith.mulf %199, %186 : vector<8x64xf32>
    %201 = arith.mulf %180, %180 : vector<8x64xf32>
    %cst_82 = arith.constant 0.000000e+00 : f32
    %202 = vector.broadcast %cst_82 : f32 to vector<8x64xf32>
    %203 = arith.subf %202, %201 : vector<8x64xf32>
    %204 = math.exp %203 : vector<8x64xf32>
    %205 = arith.mulf %200, %204 : vector<8x64xf32>
    %cst_83 = arith.constant 1.000000e+00 : f32
    %206 = vector.broadcast %cst_83 : f32 to vector<8x64xf32>
    %207 = arith.subf %206, %205 : vector<8x64xf32>
    %208 = arith.mulf %179, %207 : vector<8x64xf32>
    %cst_84 = arith.constant 1.000000e+00 : f32
    %209 = vector.broadcast %cst_84 : f32 to vector<8x64xf32>
    %210 = arith.addf %209, %208 : vector<8x64xf32>
    %211 = arith.mulf %172, %210 : vector<8x64xf32>
    %c0_85 = arith.constant 0 : index
    %c0_86 = arith.constant 0 : index
    %212 = vector.load %arg15[%c0_85, %c0_86] : memref<64x32xf32, #tpu.memory_space<vmem>>, vector<64x32xf32>
    %cst_87 = arith.constant dense<0.000000e+00> : vector<8x32xf32>
    %213 = tpu.matmul %211, %212, %cst_87 {dimension_numbers = #tpu.dot_dimension_numbers<[1], [0], [0], [1], [0, 0, 1, 1], [], []>} : vector<8x64xf32>, vector<64x32xf32>, vector<8x32xf32> -> vector<8x32xf32>
    %c0_88 = arith.constant 0 : index
    %c0_89 = arith.constant 0 : index
    %214 = vector.load %arg16[%c0_88, %c0_89] : memref<1x32xf32, #tpu.memory_space<vmem>>, vector<1x32xf32>
    %215 = vector.broadcast %214 : vector<1x32xf32> to vector<8x32xf32>
    %216 = arith.addf %213, %215 : vector<8x32xf32>
    %217 = arith.addf %139, %216 : vector<8x32xf32>
    %c0_90 = arith.constant 0 : index
    %c0_91 = arith.constant 0 : index
    %218 = vector.load %arg18[%c0_90, %c0_91] : memref<2x32xf32, #tpu.memory_space<vmem>>, vector<1x32xf32>
    %c1_92 = arith.constant 1 : index
    %c0_93 = arith.constant 0 : index
    %219 = vector.load %arg18[%c1_92, %c0_93] : memref<2x32xf32, #tpu.memory_space<vmem>>, vector<1x32xf32>
    %cst_94 = arith.constant dense<0.000000e+00> : vector<8xf32>
    %220 = vector.multi_reduction <add>, %217, %cst_94 [1] : vector<8x32xf32> to vector<8xf32>
    %221 = vector.shape_cast %220 : vector<8xf32> to vector<8x1xf32>
    %cst_95 = arith.constant 3.200000e+01 : f32
    %222 = vector.broadcast %cst_95 : f32 to vector<8x1xf32>
    %223 = arith.divf %221, %222 : vector<8x1xf32>
    %224 = vector.broadcast %223 : vector<8x1xf32> to vector<8x32xf32>
    %225 = arith.subf %217, %224 : vector<8x32xf32>
    %226 = vector.broadcast %223 : vector<8x1xf32> to vector<8x32xf32>
    %227 = arith.subf %217, %226 : vector<8x32xf32>
    %228 = arith.mulf %225, %227 : vector<8x32xf32>
    %cst_96 = arith.constant dense<0.000000e+00> : vector<8xf32>
    %229 = vector.multi_reduction <add>, %228, %cst_96 [1] : vector<8x32xf32> to vector<8xf32>
    %230 = vector.shape_cast %229 : vector<8xf32> to vector<8x1xf32>
    %cst_97 = arith.constant 3.200000e+01 : f32
    %231 = vector.broadcast %cst_97 : f32 to vector<8x1xf32>
    %232 = arith.divf %230, %231 : vector<8x1xf32>
    %233 = vector.broadcast %223 : vector<8x1xf32> to vector<8x32xf32>
    %234 = arith.subf %217, %233 : vector<8x32xf32>
    %cst_98 = arith.constant 9.99999974E-6 : f32
    %235 = vector.broadcast %cst_98 : f32 to vector<8x1xf32>
    %236 = arith.addf %232, %235 : vector<8x1xf32>
    %237 = math.rsqrt %236 : vector<8x1xf32>
    %238 = vector.broadcast %237 : vector<8x1xf32> to vector<8x32xf32>
    %239 = arith.mulf %234, %238 : vector<8x32xf32>
    %240 = vector.broadcast %218 : vector<1x32xf32> to vector<8x32xf32>
    %241 = arith.mulf %239, %240 : vector<8x32xf32>
    %242 = vector.broadcast %219 : vector<1x32xf32> to vector<8x32xf32>
    %243 = arith.addf %241, %242 : vector<8x32xf32>
    %c0_99 = arith.constant 0 : index
    %c0_100 = arith.constant 0 : index
    %244 = vector.load %arg2[%c0_99, %c0_100] : memref<8x1xi32, #tpu.memory_space<vmem>>, vector<8x1xi32>
    %245 = tpu.iota {dimensions = array<i32: 1>} : vector<8x128xi32>
    %246 = vector.broadcast %244 : vector<8x1xi32> to vector<8x128xi32>
    %247 = arith.cmpi eq, %245, %246 : vector<8x128xi32>
    %248 = arith.extui %247 : vector<8x128xi1> to vector<8x128xi32>
    %249 = arith.sitofp %248 : vector<8x128xi32> to vector<8x128xf32>
    %c0_101 = arith.constant 0 : index
    %c0_102 = arith.constant 0 : index
    %250 = vector.load %arg5[%c0_101, %c0_102] : memref<128x32xf32, #tpu.memory_space<vmem>>, vector<128x32xf32>
    %cst_103 = arith.constant dense<0.000000e+00> : vector<8x32xf32>
    %251 = tpu.matmul %249, %250, %cst_103 {dimension_numbers = #tpu.dot_dimension_numbers<[1], [0], [0], [1], [0, 0, 1, 1], [], []>} : vector<8x128xf32>, vector<128x32xf32>, vector<8x32xf32> -> vector<8x32xf32>
    %cst_104 = arith.constant 5.65685415 : f32
    %252 = vector.broadcast %cst_104 : f32 to vector<8x32xf32>
    %253 = arith.mulf %251, %252 : vector<8x32xf32>
    %c0_105 = arith.constant 0 : index
    %c0_106 = arith.constant 0 : index
    %254 = vector.load %arg6[%c0_105, %c0_106] : memref<8x32xf32, #tpu.memory_space<vmem>>, vector<8x32xf32>
    %255 = arith.addf %253, %254 : vector<8x32xf32>
    %c0_107 = arith.constant 0 : index
    %c0_108 = arith.constant 0 : index
    %256 = vector.load %arg19[%c0_107, %c0_108] : memref<2x32xf32, #tpu.memory_space<vmem>>, vector<1x32xf32>
    %c1_109 = arith.constant 1 : index
    %c0_110 = arith.constant 0 : index
    %257 = vector.load %arg19[%c1_109, %c0_110] : memref<2x32xf32, #tpu.memory_space<vmem>>, vector<1x32xf32>
    %cst_111 = arith.constant dense<0.000000e+00> : vector<8xf32>
    %258 = vector.multi_reduction <add>, %255, %cst_111 [1] : vector<8x32xf32> to vector<8xf32>
    %259 = vector.shape_cast %258 : vector<8xf32> to vector<8x1xf32>
    %cst_112 = arith.constant 3.200000e+01 : f32
    %260 = vector.broadcast %cst_112 : f32 to vector<8x1xf32>
    %261 = arith.divf %259, %260 : vector<8x1xf32>
    %262 = vector.broadcast %261 : vector<8x1xf32> to vector<8x32xf32>
    %263 = arith.subf %255, %262 : vector<8x32xf32>
    %264 = vector.broadcast %261 : vector<8x1xf32> to vector<8x32xf32>
    %265 = arith.subf %255, %264 : vector<8x32xf32>
    %266 = arith.mulf %263, %265 : vector<8x32xf32>
    %cst_113 = arith.constant dense<0.000000e+00> : vector<8xf32>
    %267 = vector.multi_reduction <add>, %266, %cst_113 [1] : vector<8x32xf32> to vector<8xf32>
    %268 = vector.shape_cast %267 : vector<8xf32> to vector<8x1xf32>
    %cst_114 = arith.constant 3.200000e+01 : f32
    %269 = vector.broadcast %cst_114 : f32 to vector<8x1xf32>
    %270 = arith.divf %268, %269 : vector<8x1xf32>
    %271 = vector.broadcast %261 : vector<8x1xf32> to vector<8x32xf32>
    %272 = arith.subf %255, %271 : vector<8x32xf32>
    %cst_115 = arith.constant 9.99999974E-6 : f32
    %273 = vector.broadcast %cst_115 : f32 to vector<8x1xf32>
    %274 = arith.addf %270, %273 : vector<8x1xf32>
    %275 = math.rsqrt %274 : vector<8x1xf32>
    %276 = vector.broadcast %275 : vector<8x1xf32> to vector<8x32xf32>
    %277 = arith.mulf %272, %276 : vector<8x32xf32>
    %278 = vector.broadcast %256 : vector<1x32xf32> to vector<8x32xf32>
    %279 = arith.mulf %277, %278 : vector<8x32xf32>
    %280 = vector.broadcast %257 : vector<1x32xf32> to vector<8x32xf32>
    %281 = arith.addf %279, %280 : vector<8x32xf32>
    %c0_116 = arith.constant 0 : index
    %c0_117 = arith.constant 0 : index
    %282 = vector.load %arg24[%c0_116, %c0_117] : memref<2x32xf32, #tpu.memory_space<vmem>>, vector<1x32xf32>
    %c1_118 = arith.constant 1 : index
    %c0_119 = arith.constant 0 : index
    %283 = vector.load %arg24[%c1_118, %c0_119] : memref<2x32xf32, #tpu.memory_space<vmem>>, vector<1x32xf32>
    %cst_120 = arith.constant dense<0.000000e+00> : vector<8xf32>
    %284 = vector.multi_reduction <add>, %281, %cst_120 [1] : vector<8x32xf32> to vector<8xf32>
    %285 = vector.shape_cast %284 : vector<8xf32> to vector<8x1xf32>
    %cst_121 = arith.constant 3.200000e+01 : f32
    %286 = vector.broadcast %cst_121 : f32 to vector<8x1xf32>
    %287 = arith.divf %285, %286 : vector<8x1xf32>
    %288 = vector.broadcast %287 : vector<8x1xf32> to vector<8x32xf32>
    %289 = arith.subf %281, %288 : vector<8x32xf32>
    %290 = vector.broadcast %287 : vector<8x1xf32> to vector<8x32xf32>
    %291 = arith.subf %281, %290 : vector<8x32xf32>
    %292 = arith.mulf %289, %291 : vector<8x32xf32>
    %cst_122 = arith.constant dense<0.000000e+00> : vector<8xf32>
    %293 = vector.multi_reduction <add>, %292, %cst_122 [1] : vector<8x32xf32> to vector<8xf32>
    %294 = vector.shape_cast %293 : vector<8xf32> to vector<8x1xf32>
    %cst_123 = arith.constant 3.200000e+01 : f32
    %295 = vector.broadcast %cst_123 : f32 to vector<8x1xf32>
    %296 = arith.divf %294, %295 : vector<8x1xf32>
    %297 = vector.broadcast %287 : vector<8x1xf32> to vector<8x32xf32>
    %298 = arith.subf %281, %297 : vector<8x32xf32>
    %cst_124 = arith.constant 9.99999974E-6 : f32
    %299 = vector.broadcast %cst_124 : f32 to vector<8x1xf32>
    %300 = arith.addf %296, %299 : vector<8x1xf32>
    %301 = math.rsqrt %300 : vector<8x1xf32>
    %302 = vector.broadcast %301 : vector<8x1xf32> to vector<8x32xf32>
    %303 = arith.mulf %298, %302 : vector<8x32xf32>
    %304 = vector.broadcast %282 : vector<1x32xf32> to vector<8x32xf32>
    %305 = arith.mulf %303, %304 : vector<8x32xf32>
    %306 = vector.broadcast %283 : vector<1x32xf32> to vector<8x32xf32>
    %307 = arith.addf %305, %306 : vector<8x32xf32>
    %c0_125 = arith.constant 0 : index
    %c0_126 = arith.constant 0 : index
    %308 = vector.load %arg20[%c0_125, %c0_126] : memref<32x96xf32, #tpu.memory_space<vmem>>, vector<32x96xf32>
    %cst_127 = arith.constant dense<0.000000e+00> : vector<8x96xf32>
    %309 = tpu.matmul %307, %308, %cst_127 {dimension_numbers = #tpu.dot_dimension_numbers<[1], [0], [0], [1], [0, 0, 1, 1], [], []>} : vector<8x32xf32>, vector<32x96xf32>, vector<8x96xf32> -> vector<8x96xf32>
    %c0_128 = arith.constant 0 : index
    %c0_129 = arith.constant 0 : index
    %310 = vector.load %arg21[%c0_128, %c0_129] : memref<1x96xf32, #tpu.memory_space<vmem>>, vector<1x96xf32>
    %311 = vector.broadcast %310 : vector<1x96xf32> to vector<8x96xf32>
    %312 = arith.addf %309, %311 : vector<8x96xf32>
    %313 = vector.extract_strided_slice %312 {offsets = [0, 0], sizes = [8, 32], strides = [1, 1]} : vector<8x96xf32> to vector<8x32xf32>
    %314 = vector.extract_strided_slice %312 {offsets = [0, 32], sizes = [8, 32], strides = [1, 1]} : vector<8x96xf32> to vector<8x32xf32>
    %315 = vector.extract_strided_slice %312 {offsets = [0, 64], sizes = [8, 32], strides = [1, 1]} : vector<8x96xf32> to vector<8x32xf32>
    %c0_130 = arith.constant 0 : index
    %c0_131 = arith.constant 0 : index
    %316 = vector.load %arg23[%c0_130, %c0_131] : memref<1x32xf32, #tpu.memory_space<vmem>>, vector<1x32xf32>
    %317 = vector.extract_strided_slice %313 {offsets = [0, 0], sizes = [8, 16], strides = [1, 1]} : vector<8x32xf32> to vector<8x16xf32>
    %318 = vector.extract_strided_slice %314 {offsets = [0, 0], sizes = [8, 16], strides = [1, 1]} : vector<8x32xf32> to vector<8x16xf32>
    %319 = vector.extract_strided_slice %315 {offsets = [0, 0], sizes = [8, 16], strides = [1, 1]} : vector<8x32xf32> to vector<8x16xf32>
    %320 = tpu.transpose %318, [1, 0] : vector<8x16xf32> -> vector<16x8xf32>
    %cst_132 = arith.constant dense<0.000000e+00> : vector<8x8xf32>
    %321 = tpu.matmul %317, %320, %cst_132 {dimension_numbers = #tpu.dot_dimension_numbers<[1], [0], [0], [1], [0, 0, 1, 1], [], []>} : vector<8x16xf32>, vector<16x8xf32>, vector<8x8xf32> -> vector<8x8xf32>
    %cst_133 = arith.constant 2.500000e-01 : f32
    %322 = vector.broadcast %cst_133 : f32 to vector<8x8xf32>
    %323 = arith.mulf %321, %322 : vector<8x8xf32>
    %324 = arith.addf %323, %18 : vector<8x8xf32>
    %cst_134 = arith.constant dense<0xFF800000> : vector<8xf32>
    %325 = vector.multi_reduction <maximumf>, %324, %cst_134 [1] : vector<8x8xf32> to vector<8xf32>
    %326 = vector.shape_cast %325 : vector<8xf32> to vector<8x1xf32>
    %327 = vector.broadcast %326 : vector<8x1xf32> to vector<8x8xf32>
    %328 = arith.subf %324, %327 : vector<8x8xf32>
    %329 = math.exp %328 : vector<8x8xf32>
    %cst_135 = arith.constant dense<0.000000e+00> : vector<8xf32>
    %330 = vector.multi_reduction <add>, %329, %cst_135 [1] : vector<8x8xf32> to vector<8xf32>
    %331 = vector.shape_cast %330 : vector<8xf32> to vector<8x1xf32>
    %332 = tpu.reciprocal %331 {approx = true} : vector<8x1xf32> -> vector<8x1xf32>
    %333 = vector.broadcast %332 : vector<8x1xf32> to vector<8x8xf32>
    %334 = arith.mulf %329, %333 : vector<8x8xf32>
    %cst_136 = arith.constant dense<0.000000e+00> : vector<8x16xf32>
    %335 = tpu.matmul %334, %319, %cst_136 {dimension_numbers = #tpu.dot_dimension_numbers<[1], [0], [0], [1], [0, 0, 1, 1], [], []>} : vector<8x8xf32>, vector<8x16xf32>, vector<8x16xf32> -> vector<8x16xf32>
    %c0_137 = arith.constant 0 : index
    %c0_138 = arith.constant 0 : index
    %336 = vector.load %arg22[%c0_137, %c0_138] : memref<32x32xf32, #tpu.memory_space<vmem>>, vector<16x32xf32>
    %cst_139 = arith.constant dense<0.000000e+00> : vector<8x32xf32>
    %337 = tpu.matmul %335, %336, %cst_139 {dimension_numbers = #tpu.dot_dimension_numbers<[1], [0], [0], [1], [0, 0, 1, 1], [], []>} : vector<8x16xf32>, vector<16x32xf32>, vector<8x32xf32> -> vector<8x32xf32>
    %338 = vector.broadcast %316 : vector<1x32xf32> to vector<8x32xf32>
    %339 = arith.addf %338, %337 : vector<8x32xf32>
    %340 = vector.extract_strided_slice %313 {offsets = [0, 16], sizes = [8, 16], strides = [1, 1]} : vector<8x32xf32> to vector<8x16xf32>
    %341 = vector.extract_strided_slice %314 {offsets = [0, 16], sizes = [8, 16], strides = [1, 1]} : vector<8x32xf32> to vector<8x16xf32>
    %342 = vector.extract_strided_slice %315 {offsets = [0, 16], sizes = [8, 16], strides = [1, 1]} : vector<8x32xf32> to vector<8x16xf32>
    %343 = tpu.transpose %341, [1, 0] : vector<8x16xf32> -> vector<16x8xf32>
    %cst_140 = arith.constant dense<0.000000e+00> : vector<8x8xf32>
    %344 = tpu.matmul %340, %343, %cst_140 {dimension_numbers = #tpu.dot_dimension_numbers<[1], [0], [0], [1], [0, 0, 1, 1], [], []>} : vector<8x16xf32>, vector<16x8xf32>, vector<8x8xf32> -> vector<8x8xf32>
    %cst_141 = arith.constant 2.500000e-01 : f32
    %345 = vector.broadcast %cst_141 : f32 to vector<8x8xf32>
    %346 = arith.mulf %344, %345 : vector<8x8xf32>
    %347 = arith.addf %346, %18 : vector<8x8xf32>
    %cst_142 = arith.constant dense<0xFF800000> : vector<8xf32>
    %348 = vector.multi_reduction <maximumf>, %347, %cst_142 [1] : vector<8x8xf32> to vector<8xf32>
    %349 = vector.shape_cast %348 : vector<8xf32> to vector<8x1xf32>
    %350 = vector.broadcast %349 : vector<8x1xf32> to vector<8x8xf32>
    %351 = arith.subf %347, %350 : vector<8x8xf32>
    %352 = math.exp %351 : vector<8x8xf32>
    %cst_143 = arith.constant dense<0.000000e+00> : vector<8xf32>
    %353 = vector.multi_reduction <add>, %352, %cst_143 [1] : vector<8x8xf32> to vector<8xf32>
    %354 = vector.shape_cast %353 : vector<8xf32> to vector<8x1xf32>
    %355 = tpu.reciprocal %354 {approx = true} : vector<8x1xf32> -> vector<8x1xf32>
    %356 = vector.broadcast %355 : vector<8x1xf32> to vector<8x8xf32>
    %357 = arith.mulf %352, %356 : vector<8x8xf32>
    %cst_144 = arith.constant dense<0.000000e+00> : vector<8x16xf32>
    %358 = tpu.matmul %357, %342, %cst_144 {dimension_numbers = #tpu.dot_dimension_numbers<[1], [0], [0], [1], [0, 0, 1, 1], [], []>} : vector<8x8xf32>, vector<8x16xf32>, vector<8x16xf32> -> vector<8x16xf32>
    %c16_145 = arith.constant 16 : index
    %c0_146 = arith.constant 0 : index
    %359 = vector.load %arg22[%c16_145, %c0_146] : memref<32x32xf32, #tpu.memory_space<vmem>>, vector<16x32xf32>
    %cst_147 = arith.constant dense<0.000000e+00> : vector<8x32xf32>
    %360 = tpu.matmul %358, %359, %cst_147 {dimension_numbers = #tpu.dot_dimension_numbers<[1], [0], [0], [1], [0, 0, 1, 1], [], []>} : vector<8x16xf32>, vector<16x32xf32>, vector<8x32xf32> -> vector<8x32xf32>
    %361 = arith.addf %339, %360 : vector<8x32xf32>
    %362 = arith.addf %281, %361 : vector<8x32xf32>
    %c0_148 = arith.constant 0 : index
    %c0_149 = arith.constant 0 : index
    %363 = vector.load %arg31[%c0_148, %c0_149] : memref<2x32xf32, #tpu.memory_space<vmem>>, vector<1x32xf32>
    %c1_150 = arith.constant 1 : index
    %c0_151 = arith.constant 0 : index
    %364 = vector.load %arg31[%c1_150, %c0_151] : memref<2x32xf32, #tpu.memory_space<vmem>>, vector<1x32xf32>
    %cst_152 = arith.constant dense<0.000000e+00> : vector<8xf32>
    %365 = vector.multi_reduction <add>, %362, %cst_152 [1] : vector<8x32xf32> to vector<8xf32>
    %366 = vector.shape_cast %365 : vector<8xf32> to vector<8x1xf32>
    %cst_153 = arith.constant 3.200000e+01 : f32
    %367 = vector.broadcast %cst_153 : f32 to vector<8x1xf32>
    %368 = arith.divf %366, %367 : vector<8x1xf32>
    %369 = vector.broadcast %368 : vector<8x1xf32> to vector<8x32xf32>
    %370 = arith.subf %362, %369 : vector<8x32xf32>
    %371 = vector.broadcast %368 : vector<8x1xf32> to vector<8x32xf32>
    %372 = arith.subf %362, %371 : vector<8x32xf32>
    %373 = arith.mulf %370, %372 : vector<8x32xf32>
    %cst_154 = arith.constant dense<0.000000e+00> : vector<8xf32>
    %374 = vector.multi_reduction <add>, %373, %cst_154 [1] : vector<8x32xf32> to vector<8xf32>
    %375 = vector.shape_cast %374 : vector<8xf32> to vector<8x1xf32>
    %cst_155 = arith.constant 3.200000e+01 : f32
    %376 = vector.broadcast %cst_155 : f32 to vector<8x1xf32>
    %377 = arith.divf %375, %376 : vector<8x1xf32>
    %378 = vector.broadcast %368 : vector<8x1xf32> to vector<8x32xf32>
    %379 = arith.subf %362, %378 : vector<8x32xf32>
    %cst_156 = arith.constant 9.99999974E-6 : f32
    %380 = vector.broadcast %cst_156 : f32 to vector<8x1xf32>
    %381 = arith.addf %377, %380 : vector<8x1xf32>
    %382 = math.rsqrt %381 : vector<8x1xf32>
    %383 = vector.broadcast %382 : vector<8x1xf32> to vector<8x32xf32>
    %384 = arith.mulf %379, %383 : vector<8x32xf32>
    %385 = vector.broadcast %363 : vector<1x32xf32> to vector<8x32xf32>
    %386 = arith.mulf %384, %385 : vector<8x32xf32>
    %387 = vector.broadcast %364 : vector<1x32xf32> to vector<8x32xf32>
    %388 = arith.addf %386, %387 : vector<8x32xf32>
    %c0_157 = arith.constant 0 : index
    %c0_158 = arith.constant 0 : index
    %389 = vector.load %arg25[%c0_157, %c0_158] : memref<32x32xf32, #tpu.memory_space<vmem>>, vector<32x32xf32>
    %cst_159 = arith.constant dense<0.000000e+00> : vector<8x32xf32>
    %390 = tpu.matmul %388, %389, %cst_159 {dimension_numbers = #tpu.dot_dimension_numbers<[1], [0], [0], [1], [0, 0, 1, 1], [], []>} : vector<8x32xf32>, vector<32x32xf32>, vector<8x32xf32> -> vector<8x32xf32>
    %c0_160 = arith.constant 0 : index
    %c0_161 = arith.constant 0 : index
    %391 = vector.load %arg26[%c0_160, %c0_161] : memref<1x32xf32, #tpu.memory_space<vmem>>, vector<1x32xf32>
    %392 = vector.broadcast %391 : vector<1x32xf32> to vector<8x32xf32>
    %393 = arith.addf %390, %392 : vector<8x32xf32>
    %c0_162 = arith.constant 0 : index
    %c0_163 = arith.constant 0 : index
    %394 = vector.load %arg27[%c0_162, %c0_163] : memref<32x64xf32, #tpu.memory_space<vmem>>, vector<32x64xf32>
    %cst_164 = arith.constant dense<0.000000e+00> : vector<8x64xf32>
    %395 = tpu.matmul %243, %394, %cst_164 {dimension_numbers = #tpu.dot_dimension_numbers<[1], [0], [0], [1], [0, 0, 1, 1], [], []>} : vector<8x32xf32>, vector<32x64xf32>, vector<8x64xf32> -> vector<8x64xf32>
    %c0_165 = arith.constant 0 : index
    %c0_166 = arith.constant 0 : index
    %396 = vector.load %arg28[%c0_165, %c0_166] : memref<1x64xf32, #tpu.memory_space<vmem>>, vector<1x64xf32>
    %397 = vector.broadcast %396 : vector<1x64xf32> to vector<8x64xf32>
    %398 = arith.addf %395, %397 : vector<8x64xf32>
    %399 = vector.extract_strided_slice %398 {offsets = [0, 0], sizes = [8, 32], strides = [1, 1]} : vector<8x64xf32> to vector<8x32xf32>
    %400 = vector.extract_strided_slice %398 {offsets = [0, 32], sizes = [8, 32], strides = [1, 1]} : vector<8x64xf32> to vector<8x32xf32>
    %c0_167 = arith.constant 0 : index
    %c0_168 = arith.constant 0 : index
    %401 = vector.load %arg30[%c0_167, %c0_168] : memref<1x32xf32, #tpu.memory_space<vmem>>, vector<1x32xf32>
    %402 = vector.extract_strided_slice %393 {offsets = [0, 0], sizes = [8, 16], strides = [1, 1]} : vector<8x32xf32> to vector<8x16xf32>
    %403 = vector.extract_strided_slice %399 {offsets = [0, 0], sizes = [8, 16], strides = [1, 1]} : vector<8x32xf32> to vector<8x16xf32>
    %404 = vector.extract_strided_slice %400 {offsets = [0, 0], sizes = [8, 16], strides = [1, 1]} : vector<8x32xf32> to vector<8x16xf32>
    %405 = tpu.transpose %403, [1, 0] : vector<8x16xf32> -> vector<16x8xf32>
    %cst_169 = arith.constant dense<0.000000e+00> : vector<8x8xf32>
    %406 = tpu.matmul %402, %405, %cst_169 {dimension_numbers = #tpu.dot_dimension_numbers<[1], [0], [0], [1], [0, 0, 1, 1], [], []>} : vector<8x16xf32>, vector<16x8xf32>, vector<8x8xf32> -> vector<8x8xf32>
    %cst_170 = arith.constant 2.500000e-01 : f32
    %407 = vector.broadcast %cst_170 : f32 to vector<8x8xf32>
    %408 = arith.mulf %406, %407 : vector<8x8xf32>
    %409 = vector.broadcast %7 : vector<1x8xf32> to vector<8x8xf32>
    %410 = arith.addf %408, %409 : vector<8x8xf32>
    %cst_171 = arith.constant dense<0xFF800000> : vector<8xf32>
    %411 = vector.multi_reduction <maximumf>, %410, %cst_171 [1] : vector<8x8xf32> to vector<8xf32>
    %412 = vector.shape_cast %411 : vector<8xf32> to vector<8x1xf32>
    %413 = vector.broadcast %412 : vector<8x1xf32> to vector<8x8xf32>
    %414 = arith.subf %410, %413 : vector<8x8xf32>
    %415 = math.exp %414 : vector<8x8xf32>
    %cst_172 = arith.constant dense<0.000000e+00> : vector<8xf32>
    %416 = vector.multi_reduction <add>, %415, %cst_172 [1] : vector<8x8xf32> to vector<8xf32>
    %417 = vector.shape_cast %416 : vector<8xf32> to vector<8x1xf32>
    %418 = tpu.reciprocal %417 {approx = true} : vector<8x1xf32> -> vector<8x1xf32>
    %419 = vector.broadcast %418 : vector<8x1xf32> to vector<8x8xf32>
    %420 = arith.mulf %415, %419 : vector<8x8xf32>
    %cst_173 = arith.constant dense<0.000000e+00> : vector<8x16xf32>
    %421 = tpu.matmul %420, %404, %cst_173 {dimension_numbers = #tpu.dot_dimension_numbers<[1], [0], [0], [1], [0, 0, 1, 1], [], []>} : vector<8x8xf32>, vector<8x16xf32>, vector<8x16xf32> -> vector<8x16xf32>
    %c0_174 = arith.constant 0 : index
    %c0_175 = arith.constant 0 : index
    %422 = vector.load %arg29[%c0_174, %c0_175] : memref<32x32xf32, #tpu.memory_space<vmem>>, vector<16x32xf32>
    %cst_176 = arith.constant dense<0.000000e+00> : vector<8x32xf32>
    %423 = tpu.matmul %421, %422, %cst_176 {dimension_numbers = #tpu.dot_dimension_numbers<[1], [0], [0], [1], [0, 0, 1, 1], [], []>} : vector<8x16xf32>, vector<16x32xf32>, vector<8x32xf32> -> vector<8x32xf32>
    %424 = vector.broadcast %401 : vector<1x32xf32> to vector<8x32xf32>
    %425 = arith.addf %424, %423 : vector<8x32xf32>
    %426 = vector.extract_strided_slice %393 {offsets = [0, 16], sizes = [8, 16], strides = [1, 1]} : vector<8x32xf32> to vector<8x16xf32>
    %427 = vector.extract_strided_slice %399 {offsets = [0, 16], sizes = [8, 16], strides = [1, 1]} : vector<8x32xf32> to vector<8x16xf32>
    %428 = vector.extract_strided_slice %400 {offsets = [0, 16], sizes = [8, 16], strides = [1, 1]} : vector<8x32xf32> to vector<8x16xf32>
    %429 = tpu.transpose %427, [1, 0] : vector<8x16xf32> -> vector<16x8xf32>
    %cst_177 = arith.constant dense<0.000000e+00> : vector<8x8xf32>
    %430 = tpu.matmul %426, %429, %cst_177 {dimension_numbers = #tpu.dot_dimension_numbers<[1], [0], [0], [1], [0, 0, 1, 1], [], []>} : vector<8x16xf32>, vector<16x8xf32>, vector<8x8xf32> -> vector<8x8xf32>
    %cst_178 = arith.constant 2.500000e-01 : f32
    %431 = vector.broadcast %cst_178 : f32 to vector<8x8xf32>
    %432 = arith.mulf %430, %431 : vector<8x8xf32>
    %433 = vector.broadcast %7 : vector<1x8xf32> to vector<8x8xf32>
    %434 = arith.addf %432, %433 : vector<8x8xf32>
    %cst_179 = arith.constant dense<0xFF800000> : vector<8xf32>
    %435 = vector.multi_reduction <maximumf>, %434, %cst_179 [1] : vector<8x8xf32> to vector<8xf32>
    %436 = vector.shape_cast %435 : vector<8xf32> to vector<8x1xf32>
    %437 = vector.broadcast %436 : vector<8x1xf32> to vector<8x8xf32>
    %438 = arith.subf %434, %437 : vector<8x8xf32>
    %439 = math.exp %438 : vector<8x8xf32>
    %cst_180 = arith.constant dense<0.000000e+00> : vector<8xf32>
    %440 = vector.multi_reduction <add>, %439, %cst_180 [1] : vector<8x8xf32> to vector<8xf32>
    %441 = vector.shape_cast %440 : vector<8xf32> to vector<8x1xf32>
    %442 = tpu.reciprocal %441 {approx = true} : vector<8x1xf32> -> vector<8x1xf32>
    %443 = vector.broadcast %442 : vector<8x1xf32> to vector<8x8xf32>
    %444 = arith.mulf %439, %443 : vector<8x8xf32>
    %cst_181 = arith.constant dense<0.000000e+00> : vector<8x16xf32>
    %445 = tpu.matmul %444, %428, %cst_181 {dimension_numbers = #tpu.dot_dimension_numbers<[1], [0], [0], [1], [0, 0, 1, 1], [], []>} : vector<8x8xf32>, vector<8x16xf32>, vector<8x16xf32> -> vector<8x16xf32>
    %c16_182 = arith.constant 16 : index
    %c0_183 = arith.constant 0 : index
    %446 = vector.load %arg29[%c16_182, %c0_183] : memref<32x32xf32, #tpu.memory_space<vmem>>, vector<16x32xf32>
    %cst_184 = arith.constant dense<0.000000e+00> : vector<8x32xf32>
    %447 = tpu.matmul %445, %446, %cst_184 {dimension_numbers = #tpu.dot_dimension_numbers<[1], [0], [0], [1], [0, 0, 1, 1], [], []>} : vector<8x16xf32>, vector<16x32xf32>, vector<8x32xf32> -> vector<8x32xf32>
    %448 = arith.addf %425, %447 : vector<8x32xf32>
    %449 = arith.addf %362, %448 : vector<8x32xf32>
    %c0_185 = arith.constant 0 : index
    %c0_186 = arith.constant 0 : index
    %450 = vector.load %arg36[%c0_185, %c0_186] : memref<2x32xf32, #tpu.memory_space<vmem>>, vector<1x32xf32>
    %c1_187 = arith.constant 1 : index
    %c0_188 = arith.constant 0 : index
    %451 = vector.load %arg36[%c1_187, %c0_188] : memref<2x32xf32, #tpu.memory_space<vmem>>, vector<1x32xf32>
    %cst_189 = arith.constant dense<0.000000e+00> : vector<8xf32>
    %452 = vector.multi_reduction <add>, %449, %cst_189 [1] : vector<8x32xf32> to vector<8xf32>
    %453 = vector.shape_cast %452 : vector<8xf32> to vector<8x1xf32>
    %cst_190 = arith.constant 3.200000e+01 : f32
    %454 = vector.broadcast %cst_190 : f32 to vector<8x1xf32>
    %455 = arith.divf %453, %454 : vector<8x1xf32>
    %456 = vector.broadcast %455 : vector<8x1xf32> to vector<8x32xf32>
    %457 = arith.subf %449, %456 : vector<8x32xf32>
    %458 = vector.broadcast %455 : vector<8x1xf32> to vector<8x32xf32>
    %459 = arith.subf %449, %458 : vector<8x32xf32>
    %460 = arith.mulf %457, %459 : vector<8x32xf32>
    %cst_191 = arith.constant dense<0.000000e+00> : vector<8xf32>
    %461 = vector.multi_reduction <add>, %460, %cst_191 [1] : vector<8x32xf32> to vector<8xf32>
    %462 = vector.shape_cast %461 : vector<8xf32> to vector<8x1xf32>
    %cst_192 = arith.constant 3.200000e+01 : f32
    %463 = vector.broadcast %cst_192 : f32 to vector<8x1xf32>
    %464 = arith.divf %462, %463 : vector<8x1xf32>
    %465 = vector.broadcast %455 : vector<8x1xf32> to vector<8x32xf32>
    %466 = arith.subf %449, %465 : vector<8x32xf32>
    %cst_193 = arith.constant 9.99999974E-6 : f32
    %467 = vector.broadcast %cst_193 : f32 to vector<8x1xf32>
    %468 = arith.addf %464, %467 : vector<8x1xf32>
    %469 = math.rsqrt %468 : vector<8x1xf32>
    %470 = vector.broadcast %469 : vector<8x1xf32> to vector<8x32xf32>
    %471 = arith.mulf %466, %470 : vector<8x32xf32>
    %472 = vector.broadcast %450 : vector<1x32xf32> to vector<8x32xf32>
    %473 = arith.mulf %471, %472 : vector<8x32xf32>
    %474 = vector.broadcast %451 : vector<1x32xf32> to vector<8x32xf32>
    %475 = arith.addf %473, %474 : vector<8x32xf32>
    %c0_194 = arith.constant 0 : index
    %c0_195 = arith.constant 0 : index
    %476 = vector.load %arg32[%c0_194, %c0_195] : memref<32x64xf32, #tpu.memory_space<vmem>>, vector<32x64xf32>
    %cst_196 = arith.constant dense<0.000000e+00> : vector<8x64xf32>
    %477 = tpu.matmul %475, %476, %cst_196 {dimension_numbers = #tpu.dot_dimension_numbers<[1], [0], [0], [1], [0, 0, 1, 1], [], []>} : vector<8x32xf32>, vector<32x64xf32>, vector<8x64xf32> -> vector<8x64xf32>
    %c0_197 = arith.constant 0 : index
    %c0_198 = arith.constant 0 : index
    %478 = vector.load %arg33[%c0_197, %c0_198] : memref<1x64xf32, #tpu.memory_space<vmem>>, vector<1x64xf32>
    %479 = vector.broadcast %478 : vector<1x64xf32> to vector<8x64xf32>
    %480 = arith.addf %477, %479 : vector<8x64xf32>
    %cst_199 = arith.constant 5.000000e-01 : f32
    %481 = vector.broadcast %cst_199 : f32 to vector<8x64xf32>
    %482 = arith.mulf %481, %480 : vector<8x64xf32>
    %cst_200 = arith.constant 0.707106769 : f32
    %483 = vector.broadcast %cst_200 : f32 to vector<8x64xf32>
    %484 = arith.mulf %480, %483 : vector<8x64xf32>
    %cst_201 = arith.constant 0.000000e+00 : f32
    %485 = vector.broadcast %cst_201 : f32 to vector<8x64xf32>
    %486 = arith.cmpf oge, %484, %485 : vector<8x64xf32>
    %cst_202 = arith.constant 1.000000e+00 : f32
    %cst_203 = arith.constant -1.000000e+00 : f32
    %487 = vector.broadcast %cst_202 : f32 to vector<8x64xf32>
    %488 = vector.broadcast %cst_203 : f32 to vector<8x64xf32>
    %489 = arith.select %486, %487, %488 : vector<8x64xi1>, vector<8x64xf32>
    %490 = math.absf %484 : vector<8x64xf32>
    %cst_204 = arith.constant 0.327591091 : f32
    %491 = vector.broadcast %cst_204 : f32 to vector<8x64xf32>
    %492 = arith.mulf %491, %490 : vector<8x64xf32>
    %cst_205 = arith.constant 1.000000e+00 : f32
    %493 = vector.broadcast %cst_205 : f32 to vector<8x64xf32>
    %494 = arith.addf %493, %492 : vector<8x64xf32>
    %cst_206 = arith.constant 1.000000e+00 : f32
    %495 = vector.broadcast %cst_206 : f32 to vector<8x64xf32>
    %496 = arith.divf %495, %494 : vector<8x64xf32>
    %cst_207 = arith.constant 1.06140542 : f32
    %497 = vector.broadcast %cst_207 : f32 to vector<8x64xf32>
    %498 = arith.mulf %497, %496 : vector<8x64xf32>
    %cst_208 = arith.constant -1.45315206 : f32
    %499 = vector.broadcast %cst_208 : f32 to vector<8x64xf32>
    %500 = arith.addf %498, %499 : vector<8x64xf32>
    %501 = arith.mulf %500, %496 : vector<8x64xf32>
    %cst_209 = arith.constant 1.42141378 : f32
    %502 = vector.broadcast %cst_209 : f32 to vector<8x64xf32>
    %503 = arith.addf %501, %502 : vector<8x64xf32>
    %504 = arith.mulf %503, %496 : vector<8x64xf32>
    %cst_210 = arith.constant -0.284496725 : f32
    %505 = vector.broadcast %cst_210 : f32 to vector<8x64xf32>
    %506 = arith.addf %504, %505 : vector<8x64xf32>
    %507 = arith.mulf %506, %496 : vector<8x64xf32>
    %cst_211 = arith.constant 0.254829586 : f32
    %508 = vector.broadcast %cst_211 : f32 to vector<8x64xf32>
    %509 = arith.addf %507, %508 : vector<8x64xf32>
    %510 = arith.mulf %509, %496 : vector<8x64xf32>
    %511 = arith.mulf %490, %490 : vector<8x64xf32>
    %cst_212 = arith.constant 0.000000e+00 : f32
    %512 = vector.broadcast %cst_212 : f32 to vector<8x64xf32>
    %513 = arith.subf %512, %511 : vector<8x64xf32>
    %514 = math.exp %513 : vector<8x64xf32>
    %515 = arith.mulf %510, %514 : vector<8x64xf32>
    %cst_213 = arith.constant 1.000000e+00 : f32
    %516 = vector.broadcast %cst_213 : f32 to vector<8x64xf32>
    %517 = arith.subf %516, %515 : vector<8x64xf32>
    %518 = arith.mulf %489, %517 : vector<8x64xf32>
    %cst_214 = arith.constant 1.000000e+00 : f32
    %519 = vector.broadcast %cst_214 : f32 to vector<8x64xf32>
    %520 = arith.addf %519, %518 : vector<8x64xf32>
    %521 = arith.mulf %482, %520 : vector<8x64xf32>
    %c0_215 = arith.constant 0 : index
    %c0_216 = arith.constant 0 : index
    %522 = vector.load %arg34[%c0_215, %c0_216] : memref<64x32xf32, #tpu.memory_space<vmem>>, vector<64x32xf32>
    %cst_217 = arith.constant dense<0.000000e+00> : vector<8x32xf32>
    %523 = tpu.matmul %521, %522, %cst_217 {dimension_numbers = #tpu.dot_dimension_numbers<[1], [0], [0], [1], [0, 0, 1, 1], [], []>} : vector<8x64xf32>, vector<64x32xf32>, vector<8x32xf32> -> vector<8x32xf32>
    %c0_218 = arith.constant 0 : index
    %c0_219 = arith.constant 0 : index
    %524 = vector.load %arg35[%c0_218, %c0_219] : memref<1x32xf32, #tpu.memory_space<vmem>>, vector<1x32xf32>
    %525 = vector.broadcast %524 : vector<1x32xf32> to vector<8x32xf32>
    %526 = arith.addf %523, %525 : vector<8x32xf32>
    %527 = arith.addf %449, %526 : vector<8x32xf32>
    %c0_220 = arith.constant 0 : index
    %c0_221 = arith.constant 0 : index
    %528 = vector.load %arg37[%c0_220, %c0_221] : memref<2x32xf32, #tpu.memory_space<vmem>>, vector<1x32xf32>
    %c1_222 = arith.constant 1 : index
    %c0_223 = arith.constant 0 : index
    %529 = vector.load %arg37[%c1_222, %c0_223] : memref<2x32xf32, #tpu.memory_space<vmem>>, vector<1x32xf32>
    %cst_224 = arith.constant dense<0.000000e+00> : vector<8xf32>
    %530 = vector.multi_reduction <add>, %527, %cst_224 [1] : vector<8x32xf32> to vector<8xf32>
    %531 = vector.shape_cast %530 : vector<8xf32> to vector<8x1xf32>
    %cst_225 = arith.constant 3.200000e+01 : f32
    %532 = vector.broadcast %cst_225 : f32 to vector<8x1xf32>
    %533 = arith.divf %531, %532 : vector<8x1xf32>
    %534 = vector.broadcast %533 : vector<8x1xf32> to vector<8x32xf32>
    %535 = arith.subf %527, %534 : vector<8x32xf32>
    %536 = vector.broadcast %533 : vector<8x1xf32> to vector<8x32xf32>
    %537 = arith.subf %527, %536 : vector<8x32xf32>
    %538 = arith.mulf %535, %537 : vector<8x32xf32>
    %cst_226 = arith.constant dense<0.000000e+00> : vector<8xf32>
    %539 = vector.multi_reduction <add>, %538, %cst_226 [1] : vector<8x32xf32> to vector<8xf32>
    %540 = vector.shape_cast %539 : vector<8xf32> to vector<8x1xf32>
    %cst_227 = arith.constant 3.200000e+01 : f32
    %541 = vector.broadcast %cst_227 : f32 to vector<8x1xf32>
    %542 = arith.divf %540, %541 : vector<8x1xf32>
    %543 = vector.broadcast %533 : vector<8x1xf32> to vector<8x32xf32>
    %544 = arith.subf %527, %543 : vector<8x32xf32>
    %cst_228 = arith.constant 9.99999974E-6 : f32
    %545 = vector.broadcast %cst_228 : f32 to vector<8x1xf32>
    %546 = arith.addf %542, %545 : vector<8x1xf32>
    %547 = math.rsqrt %546 : vector<8x1xf32>
    %548 = vector.broadcast %547 : vector<8x1xf32> to vector<8x32xf32>
    %549 = arith.mulf %544, %548 : vector<8x32xf32>
    %550 = vector.broadcast %528 : vector<1x32xf32> to vector<8x32xf32>
    %551 = arith.mulf %549, %550 : vector<8x32xf32>
    %552 = vector.broadcast %529 : vector<1x32xf32> to vector<8x32xf32>
    %553 = arith.addf %551, %552 : vector<8x32xf32>
    %c0_229 = arith.constant 0 : index
    %c0_230 = arith.constant 0 : index
    %554 = vector.load %arg38[%c0_229, %c0_230] : memref<8x32xf32, #tpu.memory_space<vmem>>, vector<8x32xf32>
    tpu.vector_store %arg38[%c0_229, %c0_230], %553 {strides = array<i32>} : memref<8x32xf32, #tpu.memory_space<vmem>>, vector<8x32xf32>,
    return
  }
  func.func @transform_0(%arg0: i32) -> (i32, i32) {
    %c0_i32 = arith.constant 0 : i32
    %c0_i32_0 = arith.constant 0 : i32
    return %arg0, %c0_i32 : i32, i32
  }
  func.func @transform_1(%arg0: i32) -> (i32, i32) {
    %c0_i32 = arith.constant 0 : i32
    %c0_i32_0 = arith.constant 0 : i32
    return %arg0, %c0_i32 : i32, i32
  }
  func.func @transform_2(%arg0: i32) -> (i32, i32, i32) {
    %c0_i32 = arith.constant 0 : i32
    %c0_i32_0 = arith.constant 0 : i32
    %c0_i32_1 = arith.constant 0 : i32
    return %arg0, %c0_i32, %c0_i32_0 : i32, i32, i32
  }
  func.func @transform_3(%arg0: i32) -> (i32, i32, i32) {
    %c0_i32 = arith.constant 0 : i32
    %c0_i32_0 = arith.constant 0 : i32
    %c0_i32_1 = arith.constant 0 : i32
    return %arg0, %c0_i32, %c0_i32_0 : i32, i32, i32
  }
  func.func @transform_4(%arg0: i32) -> (i32, i32) {
    %c0_i32 = arith.constant 0 : i32
    %c0_i32_0 = arith.constant 0 : i32
    %c0_i32_1 = arith.constant 0 : i32
    return %c0_i32, %c0_i32_0 : i32, i32
  }
  func.func @transform_5(%arg0: i32) -> (i32, i32) {
    %c0_i32 = arith.constant 0 : i32
    %c0_i32_0 = arith.constant 0 : i32
    %c0_i32_1 = arith.constant 0 : i32
    return %c0_i32, %c0_i32_0 : i32, i32
  }
  func.func @transform_6(%arg0: i32) -> (i32, i32) {
    %c0_i32 = arith.constant 0 : i32
    %c0_i32_0 = arith.constant 0 : i32
    %c0_i32_1 = arith.constant 0 : i32
    return %c0_i32, %c0_i32_0 : i32, i32
  }
  func.func @transform_7(%arg0: i32) -> (i32, i32) {
    %c0_i32 = arith.constant 0 : i32
    %c0_i32_0 = arith.constant 0 : i32
    %c0_i32_1 = arith.constant 0 : i32
    return %c0_i32, %c0_i32_0 : i32, i32
  }
  func.func @transform_8(%arg0: i32) -> (i32, i32) {
    %c0_i32 = arith.constant 0 : i32
    %c0_i32_0 = arith.constant 0 : i32
    %c0_i32_1 = arith.constant 0 : i32
    return %c0_i32, %c0_i32_0 : i32, i32
  }
  func.func @transform_9(%arg0: i32) -> (i32, i32) {
    %c0_i32 = arith.constant 0 : i32
    %c0_i32_0 = arith.constant 0 : i32
    %c0_i32_1 = arith.constant 0 : i32
    return %c0_i32, %c0_i32_0 : i32, i32
  }
  func.func @transform_10(%arg0: i32) -> (i32, i32) {
    %c0_i32 = arith.constant 0 : i32
    %c0_i32_0 = arith.constant 0 : i32
    %c0_i32_1 = arith.constant 0 : i32
    return %c0_i32, %c0_i32_0 : i32, i32
  }
  func.func @transform_11(%arg0: i32) -> (i32, i32) {
    %c0_i32 = arith.constant 0 : i32
    %c0_i32_0 = arith.constant 0 : i32
    %c0_i32_1 = arith.constant 0 : i32
    return %c0_i32, %c0_i32_0 : i32, i32
  }
  func.func @transform_12(%arg0: i32) -> (i32, i32) {
    %c0_i32 = arith.constant 0 : i32
    %c0_i32_0 = arith.constant 0 : i32
    %c0_i32_1 = arith.constant 0 : i32
    return %c0_i32, %c0_i32_0 : i32, i32
  }
  func.func @transform_13(%arg0: i32) -> (i32, i32) {
    %c0_i32 = arith.constant 0 : i32
    %c0_i32_0 = arith.constant 0 : i32
    %c0_i32_1 = arith.constant 0 : i32
    return %c0_i32, %c0_i32_0 : i32, i32
  }
  func.func @transform_14(%arg0: i32) -> (i32, i32) {
    %c0_i32 = arith.constant 0 : i32
    %c0_i32_0 = arith.constant 0 : i32
    %c0_i32_1 = arith.constant 0 : i32
    return %c0_i32, %c0_i32_0 : i32, i32
  }
  func.func @transform_15(%arg0: i32) -> (i32, i32) {
    %c0_i32 = arith.constant 0 : i32
    %c0_i32_0 = arith.constant 0 : i32
    %c0_i32_1 = arith.constant 0 : i32
    return %c0_i32, %c0_i32_0 : i32, i32
  }
  func.func @transform_16(%arg0: i32) -> (i32, i32) {
    %c0_i32 = arith.constant 0 : i32
    %c0_i32_0 = arith.constant 0 : i32
    %c0_i32_1 = arith.constant 0 : i32
    return %c0_i32, %c0_i32_0 : i32, i32
  }
  func.func @transform_17(%arg0: i32) -> (i32, i32) {
    %c0_i32 = arith.constant 0 : i32
    %c0_i32_0 = arith.constant 0 : i32
    %c0_i32_1 = arith.constant 0 : i32
    return %c0_i32, %c0_i32_0 : i32, i32
  }
  func.func @transform_18(%arg0: i32) -> (i32, i32) {
    %c0_i32 = arith.constant 0 : i32
    %c0_i32_0 = arith.constant 0 : i32
    %c0_i32_1 = arith.constant 0 : i32
    return %c0_i32, %c0_i32_0 : i32, i32
  }
  func.func @transform_19(%arg0: i32) -> (i32, i32) {
    %c0_i32 = arith.constant 0 : i32
    %c0_i32_0 = arith.constant 0 : i32
    %c0_i32_1 = arith.constant 0 : i32
    return %c0_i32, %c0_i32_0 : i32, i32
  }
  func.func @transform_20(%arg0: i32) -> (i32, i32) {
    %c0_i32 = arith.constant 0 : i32
    %c0_i32_0 = arith.constant 0 : i32
    %c0_i32_1 = arith.constant 0 : i32
    return %c0_i32, %c0_i32_0 : i32, i32
  }
  func.func @transform_21(%arg0: i32) -> (i32, i32) {
    %c0_i32 = arith.constant 0 : i32
    %c0_i32_0 = arith.constant 0 : i32
    %c0_i32_1 = arith.constant 0 : i32
    return %c0_i32, %c0_i32_0 : i32, i32
  }
  func.func @transform_22(%arg0: i32) -> (i32, i32) {
    %c0_i32 = arith.constant 0 : i32
    %c0_i32_0 = arith.constant 0 : i32
    %c0_i32_1 = arith.constant 0 : i32
    return %c0_i32, %c0_i32_0 : i32, i32
  }
  func.func @transform_23(%arg0: i32) -> (i32, i32) {
    %c0_i32 = arith.constant 0 : i32
    %c0_i32_0 = arith.constant 0 : i32
    %c0_i32_1 = arith.constant 0 : i32
    return %c0_i32, %c0_i32_0 : i32, i32
  }
  func.func @transform_24(%arg0: i32) -> (i32, i32) {
    %c0_i32 = arith.constant 0 : i32
    %c0_i32_0 = arith.constant 0 : i32
    %c0_i32_1 = arith.constant 0 : i32
    return %c0_i32, %c0_i32_0 : i32, i32
  }
  func.func @transform_25(%arg0: i32) -> (i32, i32) {
    %c0_i32 = arith.constant 0 : i32
    %c0_i32_0 = arith.constant 0 : i32
    %c0_i32_1 = arith.constant 0 : i32
    return %c0_i32, %c0_i32_0 : i32, i32
  }
  func.func @transform_26(%arg0: i32) -> (i32, i32) {
    %c0_i32 = arith.constant 0 : i32
    %c0_i32_0 = arith.constant 0 : i32
    %c0_i32_1 = arith.constant 0 : i32
    return %c0_i32, %c0_i32_0 : i32, i32
  }
  func.func @transform_27(%arg0: i32) -> (i32, i32) {
    %c0_i32 = arith.constant 0 : i32
    %c0_i32_0 = arith.constant 0 : i32
    %c0_i32_1 = arith.constant 0 : i32
    return %c0_i32, %c0_i32_0 : i32, i32
  }
  func.func @transform_28(%arg0: i32) -> (i32, i32) {
    %c0_i32 = arith.constant 0 : i32
    %c0_i32_0 = arith.constant 0 : i32
    %c0_i32_1 = arith.constant 0 : i32
    return %c0_i32, %c0_i32_0 : i32, i32
  }
  func.func @transform_29(%arg0: i32) -> (i32, i32) {
    %c0_i32 = arith.constant 0 : i32
    %c0_i32_0 = arith.constant 0 : i32
    %c0_i32_1 = arith.constant 0 : i32
    return %c0_i32, %c0_i32_0 : i32, i32
  }
  func.func @transform_30(%arg0: i32) -> (i32, i32) {
    %c0_i32 = arith.constant 0 : i32
    %c0_i32_0 = arith.constant 0 : i32
    %c0_i32_1 = arith.constant 0 : i32
    return %c0_i32, %c0_i32_0 : i32, i32
  }
  func.func @transform_31(%arg0: i32) -> (i32, i32) {
    %c0_i32 = arith.constant 0 : i32
    %c0_i32_0 = arith.constant 0 : i32
    %c0_i32_1 = arith.constant 0 : i32
    return %c0_i32, %c0_i32_0 : i32, i32
  }
  func.func @transform_32(%arg0: i32) -> (i32, i32) {
    %c0_i32 = arith.constant 0 : i32
    %c0_i32_0 = arith.constant 0 : i32
    %c0_i32_1 = arith.constant 0 : i32
    return %c0_i32, %c0_i32_0 : i32, i32
  }
  func.func @transform_33(%arg0: i32) -> (i32, i32) {
    %c0_i32 = arith.constant 0 : i32
    %c0_i32_0 = arith.constant 0 : i32
    %c0_i32_1 = arith.constant 0 : i32
    return %c0_i32, %c0_i32_0 : i32, i32
  }
  func.func @transform_34(%arg0: i32) -> (i32, i32) {
    %c0_i32 = arith.constant 0 : i32
    %c0_i32_0 = arith.constant 0 : i32
    %c0_i32_1 = arith.constant 0 : i32
    return %c0_i32, %c0_i32_0 : i32, i32
  }
  func.func @transform_35(%arg0: i32) -> (i32, i32) {
    %c0_i32 = arith.constant 0 : i32
    %c0_i32_0 = arith.constant 0 : i32
    %c0_i32_1 = arith.constant 0 : i32
    return %c0_i32, %c0_i32_0 : i32, i32
  }
  func.func @transform_36(%arg0: i32) -> (i32, i32) {
    %c0_i32 = arith.constant 0 : i32
    %c0_i32_0 = arith.constant 0 : i32
    %c0_i32_1 = arith.constant 0 : i32
    return %c0_i32, %c0_i32_0 : i32, i32
  }
  func.func @transform_37(%arg0: i32) -> (i32, i32) {
    %c0_i32 = arith.constant 0 : i32
    %c0_i32_0 = arith.constant 0 : i32
    return %arg0, %c0_i32 : i32, i32
  }
}

</mosaic_0001>

<bundles_post_ra>
// kernel: bartpho_extractor.1
= control target key start
LH: loop header
LB: loop body
LE: loop exit
PB: predicated region body
PF: predicated region fallthrough
CT: control target
= control target key end

     0   :  { %s4759_s6 = smov 1   ;;  %s4760_s10 = smov 2   ;;  %s5486_s0 = inlined_call_operand.smem [shape: u32[38], index: -1, kind: input, shape index: {}] }
   0x1   :  { %s4816_s5 = sld [smem:[%s5486_s0]]   ;;  %s4761_s14 = smov 3  }
   0x2   :  { %s4821_s9 = sld [smem:[%s5486_s0 + %s4759_s6]]   ;;  %s4762_s18 = smov 4  }
   0x3   :  { %s4826_s13 = sld [smem:[%s5486_s0 + %s4760_s10]]   ;;  %s4763_s22 = smov 5  }
   0x4   :  { %s4831_s17 = sld [smem:[%s5486_s0 + %s4761_s14]]   ;;  %s4764_s26 = smov 6  }
   0x5   :  { %s4836_s21 = sld [smem:[%s5486_s0 + %s4762_s18]]   ;;  %s4765_s30 = smov 7  }
   0x6   :  { %s4841_s25 = sld [smem:[%s5486_s0 + %s4763_s22]]   ;;  %s4766_s4 = smov 8  }
   0x7   :  { %5519 = sst [smem:[#allocation5_spill]] %s4816_s5  ;;  %s4767_s10 = smov 9  }
   0x8   :  { %5520 = sst [smem:[#allocation6_spill]] %s4821_s9  ;;  %s4768_s15 = smov 10  }
   0x9   :  { %5521 = sst [smem:[#allocation7_spill]] %s4826_s13  ;;  %s4769_s20 = smov 11  }
   0xa   :  { %5522 = sst [smem:[#allocation8_spill]] %s4831_s17  ;;  %s4771_s1 = smov 13  }
   0xb   :  { %s4846_s29 = sld [smem:[%s5486_s0 + %s4764_s26]]   ;;  %s4770_s26 = smov 12  }
   0xc   :  { %s4851_s3 = sld [smem:[%s5486_s0 + %s4765_s30]]   ;;  %s4772_s7 = smov 14  }
   0xd   :  { %s4856_s8 = sld [smem:[%s5486_s0 + %s4766_s4]]   ;;  %s4774_s22 = smov 16  }
   0xe   :  { %s4861_s14 = sld [smem:[%s5486_s0 + %s4767_s10]]   ;;  %s4775_s28 = smov 17  }
   0xf   :  { %s4866_s19 = sld [smem:[%s5486_s0 + %s4768_s15]]   ;;  %s4773_s15 = smov 15  }
  0x10   :  { %s4871_s24 = sld [smem:[%s5486_s0 + %s4769_s20]]  }
  0x11   :  { %s4876_s30 = sld [smem:[%s5486_s0 + %s4770_s26]]  }
  0x12   :  { %5523 = sst [smem:[#allocation9_spill]] %s4851_s3 }
  0x13   :  { %5524 = sst [smem:[#allocation10_spill]] %s4856_s8 }
  0x14   :  { %5525 = sst [smem:[#allocation11_spill]] %s4861_s14 }
  0x15   :  { %s4881_s6 = sld [smem:[%s5486_s0 + %s4771_s1]]  }
  0x16   :  { %s4886_s12 = sld [smem:[%s5486_s0 + %s4772_s7]]   ;;  %s4776_s7 = smov 18  }
  0x17   :  { %s4891_s20 = sld [smem:[%s5486_s0 + %s4773_s15]]   ;;  %s4777_s15 = smov 19  }
  0x18   :  { %s4896_s27 = sld [smem:[%s5486_s0 + %s4774_s22]]   ;;  %s4778_s22 = smov 20  }
  0x19   :  { %s4901_s4 = sld [smem:[%s5486_s0 + %s4775_s28]]   ;;  %s4779_s28 = smov 21  }
  0x1a   :  { %s4906_s17 = sld [smem:[%s5486_s0 + %s4776_s7]]   ;;  %s4780_s7 = smov 22  }
  0x1b   :  { %5526 = sst [smem:[#allocation12_spill]] %s4881_s6 }
  0x1c   :  { %5527 = sst [smem:[#allocation13_spill]] %s4886_s12 }
  0x1d   :  { %5528 = sst [smem:[#allocation14_spill]] %s4891_s20 }
  0x1e   :  { %s4911_s20 = sld [smem:[%s5486_s0 + %s4777_s15]]   ;;  %s4781_s15 = smov 23  }
  0x1f   :  { %5529 = sst [smem:[#allocation15_spill]] %s4901_s4 }
  0x20   :  { %5530 = sst [smem:[#allocation16_spill]] %s4906_s17 }
  0x21   :  { %s4916_s6 = sld [smem:[%s5486_s0 + %s4778_s22]]   ;;  %s4782_s22 = smov 24  }
  0x22   :  { %s4921_s4 = sld [smem:[%s5486_s0 + %s4779_s28]]   ;;  %s4783_s28 = smov 25  }
  0x23   :  { %s4926_s17 = sld [smem:[%s5486_s0 + %s4780_s7]]   ;;  %s4784_s7 = smov 26  }
  0x24   :  { %5531 = sst [smem:[#allocation17_spill]] %s4911_s20 }
  0x25   :  { %s4931_s20 = sld [smem:[%s5486_s0 + %s4781_s15]]   ;;  %s4785_s15 = smov 27  }
  0x27   :  { %5532 = sst [smem:[#allocation18_spill]] %s4916_s6 }
  0x28   :  { %5533 = sst [smem:[#allocation19_spill]] %s4921_s4 }
  0x29   :  { %5534 = sst [smem:[#allocation20_spill]] %s4926_s17 }
  0x2a   :  { %s4936_s6 = sld [smem:[%s5486_s0 + %s4782_s22]]   ;;  %s4786_s22 = smov 28  }
  0x2b   :  { %5535 = sst [smem:[#allocation21_spill]] %s4931_s20 }
  0x2c   :  { %s4941_s4 = sld [smem:[%s5486_s0 + %s4783_s28]]   ;;  %s4787_s28 = smov 29  }
  0x2d   :  { %s4946_s17 = sld [smem:[%s5486_s0 + %s4784_s7]]   ;;  %s4788_s7 = smov 30  }
  0x2e   :  { %s4951_s20 = sld [smem:[%s5486_s0 + %s4785_s15]]   ;;  %s4789_s15 = smov 31  }
  0x30   :  { %5536 = sst [smem:[#allocation22_spill]] %s4936_s6 }
  0x31   :  { %s4956_s6 = sld [smem:[%s5486_s0 + %s4786_s22]]   ;;  %s4790_s22 = smov 32  }
  0x32   :  { %5537 = sst [smem:[#allocation23_spill]] %s4941_s4 }
  0x33   :  { %5538 = sst [smem:[#allocation24_spill]] %s4946_s17 }
  0x34   :  { %5539 = sst [smem:[#allocation25_spill]] %s4951_s20 }
  0x35   :  { %s4961_s4 = sld [smem:[%s5486_s0 + %s4787_s28]]   ;;  %s4791_s28 = smov 33  }
  0x36   :  { %s4966_s17 = sld [smem:[%s5486_s0 + %s4788_s7]]   ;;  %s4792_s7 = smov 34  }
  0x37   :  { %5540 = sst [smem:[#allocation26_spill]] %s4956_s6 }
  0x38   :  { %s4971_s20 = sld [smem:[%s5486_s0 + %s4789_s15]]   ;;  %s4793_s15 = smov 35  }
  0x39   :  { %s4976_s6 = sld [smem:[%s5486_s0 + %s4790_s22]]   ;;  %s4794_s22 = smov 36  }
  0x3b   :  { %5541 = sst [smem:[#allocation27_spill]] %s4961_s4 }
  0x3c   :  { %5542 = sst [smem:[#allocation28_spill]] %s4966_s17 }
  0x3d   :  { %s4981_s4 = sld [smem:[%s5486_s0 + %s4791_s28]]   ;;  %s4795_s28 = smov 37  }
  0x3e   :  { %5543 = sst [smem:[#allocation29_spill]] %s4971_s20 }
  0x3f   :  { %5544 = sst [smem:[#allocation30_spill]] %s4976_s6 }
  0x40   :  { %s4986_s17 = sld [smem:[%s5486_s0 + %s4792_s7]]  }
  0x41   :  { %s4991_s20 = sld [smem:[%s5486_s0 + %s4793_s15]]  }
  0x42   :  { %s4996_s6 = sld [smem:[%s5486_s0 + %s4794_s22]]  }
  0x43   :  { %5545 = sst [smem:[#allocation31_spill]] %s4981_s4 }
  0x44   :  { %s5001_s4 = sld [smem:[%s5486_s0 + %s4795_s28]]  }
  0x48   :  { %5546 = sst [smem:[#allocation32_spill]] %s4996_s6 }
  0x49   :  { %80 = vsyncpa [#allocation3], 0 }
  0x4a   :  { %82 = vsyncpa [#allocation3 + $0x1], 0  ;;  %s5003_s7 = smov 0   ;;  %s5005_s10 = smov 0  }
  0x4b   :  { %s5007_s11 = smov 0   ;;  %s5009_s15 = smov 0  }
  0x4c LB: > { %s5547_s6 = sld [smem:[#allocation32_spill]]  ;;  %s5548_s14 = sld [smem:[#allocation11_spill]]  ;;  %s4757_s15 = sphi %s5009_s15, %s5586_s15   ;;  %s4753_s11 = sphi %s5007_s11, %s5585_s11   ;;  %s4749_s10 = sphi %s5005_s10, %s5584_s10   ;;  %s4745_s7 = sphi %s5003_s7, %s5583_s7  }
  0x4d   : > { %s5549_s12 = sld [smem:[#allocation13_spill]]  ;;  %s5550_s3 = sld [smem:[#allocation9_spill]] }
  0x4e   : > { %s5024_s0 = sadd.s32 4294967295, %s4757_s15   ;;  %s3953_s16 = sadd.s32 4294967294, %s4757_s15  }
  0x4f   : > { %s5028_s18 = sadd.s32 1, %s4757_s15   ;;  %s892_s22 = sadd.s32 1, %s4753_s11 }
  0x50   : > { %s889_s23 = ssub.s32 %s4757_s15, %s5028_s18  ;;  %p902_p0 = scmp.ne.s32.totalorder %s4753_s11, %s4749_s10 }
  0x51   : > { %p890_p1 = scmp.eq.s32.totalorder %s889_s23, 0  ;;  %p903_p2 = scmp.eq.s32.totalorder %s5024_s0, 1 }
  0x52   : > { %p908_p3 = scmp.ne.s32.totalorder %s4749_s10, %s4745_s7  ;;  %p909_p4 = scmp.eq.s32.totalorder %s3953_s16, 1 }
  0x53   : > { %s5039_s26 = scalar_select %p890_p1, %s4753_s11, %s892_s22  }
  0x54   : > { %p5041_p5 = por %p903_p2, %p902_p0  ;;  %p5045_p6 = por %p909_p4, %p908_p3 }
  0x55   : > { %p3956_p7 = scmp.ge.s32.totalorder %s4757_s15, 1  ;;  %p1052_p8 = scmp.lt.s32.totalorder %s4757_s15, 3 }
  0x57   : > { %p1053_p9 = pnand %p3956_p7, %p1052_p8 }
  0x58   : > { %p1153_p10 = scmp.lt.s32.totalorder (!%p1053_p9), %s5024_s0, 1  ;;  %v1194_v0 = vld [vmem:[%s4836_s21] sm:$0xff] (!%p1053_p9)  ;;  %v1195_v1 = vld [vmem:[%s4836_s21 + $0x8] sm:$0xff] (!%p1053_p9)  ;;  %s5553_s5 = sld [smem:[#allocation5_spill]] (!%p1053_p9)  ;;  %v1196_v2 = vld [vmem:[%s4836_s21 + $0x10] sm:$0xff] (!%p1053_p9)  ;;  %v4796_v3 = vmov (!%p1053_p9), 0   ;;  %v1171_v28 = vlaneseq (!%p1053_p9) }
  0x59   : > { %1056 = sbr.rel (%p1053_p9) target bundleno = 9467 (0x24fb), region = 168  ;;  %4644 = vset.pattern.permute.xlu0 (!%p1053_p9), %v4796_v3  ;;  %v4797_v4 = vmov (!%p1053_p9), 0.0|0.0   ;;  %v5056_v5 = vpack.c.bf16 (!%p1053_p9), %v1195_v1, %v1194_v0  ;;  %v1197_v6 = vld [vmem:[%s4836_s21 + $0x18] sm:$0xff] (!%p1053_p9)  ;;  %v1198_v8 = vld [vmem:[%s4836_s21 + $0x20] sm:$0xff] (!%p1053_p9)  ;;  %v1199_v9 = vld [vmem:[%s4836_s21 + $0x28] sm:$0xff] (!%p1053_p9)  ;;  %vm4798_vm0 = vmmov (!%p1053_p9), 0  }
  0x5a   : > { %4431 = vmatprep.subr.bf16.mxu0 (!%p1053_p9), %v4797_v4  ;;  %4455 = vmatprep.subr.bf16.mxu1 (!%p1053_p9), %v4797_v4  ;;  %v5064_v7 = vpack.c.bf16 (!%p1053_p9), %v1197_v6, %v1196_v2  ;;  %v5074_v11 = vpack.c.bf16 (!%p1053_p9), %v1199_v9, %v1198_v8  ;;  %v1200_v12 = vld [vmem:[%s4836_s21 + $0x30] sm:$0xff] (!%p1053_p9)  ;;  %v1201_v13 = vld [vmem:[%s4836_s21 + $0x38] sm:$0xff] (!%p1053_p9)  ;;  %v4799_v14 = vmov (!%p1053_p9), 0.0   ;;  %v1202_v16 = vld [vmem:[%s4836_s21 + $0x40] sm:$0xff] (!%p1053_p9)  ;;  %v5114_v29 = vand.u32 (!%p1053_p9), 127, %v1171_v28  ;;  %s5554_s8 = sld [smem:[#allocation10_spill]] (!%p1053_p9) }
  0x5b   : > { %4433 = vmatpush3.bf16.msra.mxu0 (!%p1053_p9), %v5056_v5  ;;  %4187 = vmatprep.mubr.msk.f32.mxu0 (!%p1053_p9), %vm4798_vm0, %v4799_v14  ;;  %v5084_v15 = vpack.c.bf16 (!%p1053_p9), %v1201_v13, %v1200_v12  ;;  %v1203_v17 = vld [vmem:[%s4836_s21 + $0x48] sm:$0xff] (!%p1053_p9)  ;;  %v1204_v19 = vld [vmem:[%s4836_s21 + $0x50] sm:$0xff] (!%p1053_p9)  ;;  %v1205_v20 = vld [vmem:[%s4836_s21 + $0x58] sm:$0xff] (!%p1053_p9)  ;;  %v4800_v31 = vmov (!%p1053_p9), 1.0   ;;  %vm1285_vm2 = vcmask (!%p1053_p9), 261120   ;;  %s5555_s13 = sld [smem:[#allocation7_spill]] (!%p1053_p9) }
  0x5c   : > { %4434 = vmatprep.subr.bf16.mxu0 (!%p1053_p9), %v4797_v4  ;;  %4198 = vmatprep.mubr.msk.f32.mxu1 (!%p1053_p9), %vm4798_vm0, %v4799_v14  ;;  %v5090_v18 = vpack.c.bf16 (!%p1053_p9), %v1203_v17, %v1202_v16  ;;  %v5096_v21 = vpack.c.bf16 (!%p1053_p9), %v1205_v20, %v1204_v19  ;;  %v1206_v22 = vld [vmem:[%s4836_s21 + $0x60] sm:$0xff] (!%p1053_p9)  ;;  %v1207_v23 = vld [vmem:[%s4836_s21 + $0x68] sm:$0xff] (!%p1053_p9)  ;;  %v1208_v25 = vld [vmem:[%s4836_s21 + $0x70] sm:$0xff] (!%p1053_p9)  ;;  %s5498_s23 = smov (!%p1053_p9), 96   ;;  %vm1423_vm3 = vcmask (!%p1053_p9), 130048   ;;  %vm1506_vm4 = vcmask (!%p1053_p9), 64512  }
  0x5d   : > { %v5102_v24 = vpack.c.bf16 (!%p1053_p9), %v1207_v23, %v1206_v22  ;;  %v1209_v26 = vld [vmem:[%s4836_s21 + $0x78] sm:$0xff] (!%p1053_p9)  ;;  %v5121_v33 = vld [vmem:[%s4841_s25] sm:$0xff] (!%p1053_p9)  ;;  %v1336_v59 = vld [vmem:[%s5550_s3 + $0x8] sm:$0xff] (!%p1053_p9)  ;;  %s5556_s9 = sld [smem:[#allocation6_spill]] (!%p1053_p9)  ;;  %vm2071_vm7 = vcmask (!%p1053_p9), 523264  }
  0x5e   : > { %v5108_v27 = vpack.c.bf16 (!%p1053_p9), %v1209_v26, %v1208_v25  ;;  %v3964_v47 = vld [vmem:[%s4846_s29] ss:$0 sm:$0xff] (!%p1053_p9)  ;;  %v3965_v49 = vld [vmem:[%s4846_s29 + $0x1] ss:$0 sm:$0xff] (!%p1053_p9)  ;;  %v1337_v60 = vld [vmem:[%s5550_s3 + $0x10] sm:$0xff] (!%p1053_p9)  ;;  %v5159_v25 = vshrl.u32 (!%p1053_p9), %v1171_v28, 7 }
  0x5f   : > { %4436 = vmatpush3.bf16.msra.mxu0 (!%p1053_p9), %v5064_v7  ;;  %v1335_v58 = vld [vmem:[%s5550_s3] sm:$0xff] (!%p1053_p9)  ;;  %v1338_v62 = vld [vmem:[%s5550_s3 + $0x18] sm:$0xff] (!%p1053_p9)  ;;  %s5562_s3 = sld [smem:[#allocation18_spill]] (!%p1053_p9) }
  0x60   : > { %s5060_s2 = scalar_select %p1153_p10, %s5024_s0, 1  ;;  %4437 = vmatprep.subr.bf16.mxu0 %v4797_v4  ;;  %v4456_v61 = vpack.c.bf16 %v1336_v59, %v1335_v58  ;;  %v4459_v63 = vpack.c.bf16 %v1338_v62, %v1337_v60  ;;  %v3966_v6 = vld [vmem:[%s4871_s24] ss:$0 sm:$0xff]  ;;  %v3967_v9 = vld [vmem:[%s4871_s24 + $0x1] ss:$0 sm:$0xff]  ;;  %vm1175_vm8 = vcmp.le.s32.totalorder %v5114_v29, %v5159_v25 }
  0x61   : > { %v3968_v13 = vld [vmem:[%s5554_s8] ss:$0 sm:$0xff]  ;;  %s5564_s8 = smov 96  }
  0x62   : > { %s5500_s16 = sshll.u32 %s5060_s2, 3  ;;  %4457 = vmatpush3.bf16.msra.mxu1 %v4456_v61 }
  0x63   : > { %s1156_s22 = scalar_lea.vmem %s5553_s5, %s5500_s16  ;;  %4439 = vmatpush3.bf16.msra.mxu0 %v5074_v11  ;;  %4458 = vmatprep.subr.bf16.mxu1 %v4797_v4  ;;  %s5501_s16 = smov 112  }
  0x64   : > { %v1187_v10 = vld [vmem:[%s1156_s22] sm:$0xff]  ;;  %4440 = vmatprep.subr.bf16.mxu0 %v4797_v4  ;;  %s1163_s22 = scalar_lea.vmem %s5555_s13, %s5060_s2  ;;  %s5563_s5 = sld [smem:[#allocation8_spill]] }
  0x65   : > { %1189 = vperm.xlu0 %4644, %v1187_v10   ;;  %v1167_v22 = vld [vmem:[%s1163_s22] sm:$0x1]  ;;  %s5506_s22 = smov 64   ;;  %s5576_s13 = sld [smem:[#allocation25_spill]] }
  0x66   : > { %4460 = vmatpush3.bf16.msra.mxu1 %v4459_v63  ;;  %v1169_v23 = vsub.f32 1.0, %v1167_v22 }
  0x67   : > { %4442 = vmatpush3.bf16.msra.mxu0 %v5084_v15  ;;  %4206 = vmatprep.subr.mxu1 %v4799_v14 }
  0x68   : > { %4443 = vmatprep.subr.bf16.mxu0 %v4797_v4  ;;  %v1170_v26 = vmul.f32 -1e+09, %v1169_v23 }
  0x6b   : > { %4445 = vmatpush3.bf16.msra.mxu0 %v5090_v18 }
  0x6c   : > { %4446 = vmatprep.subr.bf16.mxu0 %v4797_v4 }
  0x6f   : > { %4448 = vmatpush3.bf16.msra.mxu0 %v5096_v21 }
  0x70   : > { %4449 = vmatprep.subr.bf16.mxu0 %v4797_v4 }
  0x73   : > { %4451 = vmatpush3.bf16.msra.mxu0 %v5102_v24 }
  0x74   : > { %4452 = vmatprep.subr.bf16.mxu0 %v4797_v4 }
  0x77   : > { %4454 = vmatpush3.bf16.msra.mxu0 %v5108_v27 }
  0x78   : > { %4201 = vmatprep.subr.mxu0 %v4799_v14 }
  0xe4   : > { %v1190_v30 = vpop.permute.xlu0 %1189 }
  0xe5   : > { %vm1191_vm1 = vcmp.eq.s32.totalorder %v5114_v29, %v1190_v30  ;;  %v1502_v30 = vsub.s32 0, %v5159_v25 }
  0xe6   : > { %4188 = vmatmul.mubr.msk.f32.vlgmr.msra.gmra.mrb[0].mxu0 %vm1191_vm1, %v4800_v31 }
  0xe7   : > { %4203 = vmatprep.mubr.msk.f32.mxu0 %vm4798_vm0, %v4799_v14 }
 0x1b9   : > { %v1276_v32 = vpop.f32.mrb[0].mxu0 }
 0x1ba   : > { %v1280_v34 = vmul.f32 5.656854, %v1276_v32  ;;  %v4189_v35 = vpop.f32.mrb[1].mxu0  ;;  %v5162_v32 = vrot.slane %v1170_v26, %v1502_v30 }
 0x1bc   : > { %v1282_v36 = vadd.f32 %v5121_v33, %v1280_v34 }
 0x1be   : > { %v1286_v37 = vsel %vm1285_vm2, %v1282_v36, 0.0 }
 0x1bf   : > { %1287 = vadd.xlane.f32.xlu0 %v1286_v37 }
 0x24c   : > { %v1288_v38 = vpop.xlane.xlu0 %1287 }
 0x24d   : > { %v1290_v39 = vmul.f32 0.03125, %v1288_v38 }
 0x24f   : > { %v1291_v40 = vsub.f32 %v1282_v36, %v1290_v39 }
 0x251   : > { %v1292_v41 = vmul.f32 %v1291_v40, %v1291_v40 }
 0x253   : > { %v1293_v42 = vsel %vm1285_vm2, %v1292_v41, 0.0 }
 0x254   : > { %1294 = vadd.xlane.f32.xlu1 %v1293_v42 }
 0x2e1   : > { %v1295_v43 = vpop.xlane.xlu1 %1294 }
 0x2e2   : > { %v1296_v44 = vmul.f32 0.03125, %v1295_v43 }
 0x2e4   : > { %v1297_v45 = vadd.f32 1e-05, %v1296_v44 }
 0x2e6   : > { %4645 = vrsqrt.f32 %v1297_v45  ;;  %v1594_v45 = vld [vmem:[%s5548_s14] sm:$0xff] }
 0x2f0   : > { %v4646_v46 = vpop.eup %4645 }
 0x2f1   : > { %v1299_v48 = vmul.f32 %v4646_v46, %v1291_v40  ;;  %v1595_v46 = vld [vmem:[%s5548_s14 + $0x8] sm:$0xff] }
 0x2f3   : > { %v1304_v50 = vmul.f32 %v3964_v47, %v1299_v48  ;;  %v4462_v48 = vpack.c.bf16 %v1595_v46, %v1594_v45 }
 0x2f5   : > { %v5128_v51 = vadd.f32 %v3965_v49, %v1304_v50 }
 0x2f7   : > { %v1312_v52 = vsel %vm1285_vm2, %v5128_v51, 0.0 }
 0x2f8   : > { %1313 = vadd.xlane.f32.xlu1 %v1312_v52 }
 0x385   : > { %v1314_v53 = vpop.xlane.xlu1 %1313 }
 0x386   : > { %v1315_v54 = vmul.f32 0.03125, %v1314_v53 }
 0x388   : > { %v1316_v55 = vsub.f32 %v5128_v51, %v1315_v54 }
 0x38a   : > { %v1317_v56 = vmul.f32 %v1316_v55, %v1316_v55 }
 0x38c   : > { %v1318_v57 = vsel %vm1285_vm2, %v1317_v56, 0.0 }
 0x38d   : > { %1319 = vadd.xlane.f32.xlu1 %v1318_v57 }
 0x41a   : > { %v1320_v0 = vpop.xlane.xlu1 %1319 }
 0x41b   : > { %v1321_v1 = vmul.f32 0.03125, %v1320_v0 }
 0x41d   : > { %v1322_v2 = vadd.f32 1e-05, %v1321_v1 }
 0x41f   : > { %4647 = vrsqrt.f32 %v1322_v2 }
 0x429   : > { %v4648_v3 = vpop.eup %4647 }
 0x42a   : > { %v1324_v8 = vmul.f32 %v4648_v3, %v1316_v55 }
 0x42c   : > { %v1329_v10 = vmul.f32 %v3966_v6, %v1324_v8  ;;  %v1843_v8 = vld [vmem:[%s5548_s14 + $0x10] sm:$0xff] }
 0x42e   : > { %v1334_v12 = vadd.f32 %v3967_v9, %v1329_v10  ;;  %v1844_v9 = vld [vmem:[%s5548_s14 + $0x18] sm:$0xff] }
 0x430   : > { %4199 = vmatmul.mubr.msk.f32.vlgmr.msra.gmra.mrb[0].mxu1 %vm1285_vm2, %v1334_v12  ;;  %v4465_v12 = vpack.c.bf16 %v1844_v9, %v1843_v8 }
 0x431   : > { %4208 = vmatprep.mubr.msk.f32.mxu1 %vm4798_vm0, %v4799_v14 }
 0x503   : > { %v1415_v16 = vpop.f32.mrb[0].mxu1 }
 0x504   : > { %v5146_v17 = vadd.f32 %v3968_v13, %v1415_v16  ;;  %v4200_v19 = vpop.f32.mrb[1].mxu1 }
 0x505   : > { %v3974_v19 = vld [vmem:[%s4866_s19] ss:$0 sm:$0xff] }
 0x506   : > { %1421 = vrot.lane.b32.xlu1 %v5146_v17, %s5498_s23  ;;  %s5504_s23 = smov 80  }
 0x578   : > { %v1422_v20 = vpop.permute.xlu1 %1421 }
 0x579   : > { %4202 = vmatpush3.xpose.msk.msra.mxu0 %vm1423_vm3, %v1422_v20 }
 0x57a   : > { %4467 = vmatprep.subr.bf16.mxu0 %v4797_v4 }
 0x57c   : > { %4204 = vmatmul.mubr.msk.f32.vlgmr.msra.gmra.mrb[2].mxu0 %vm1423_vm3, %v5146_v17 }
 0x57d   : > { %4243 = vmatprep.mubr.msk.f32.mxu0 %vm4798_vm0, %v4799_v14 }
 0x64f   : > { %v1494_v34 = vpop.f32.mrb[2].mxu0 }
 0x650   : > { %v1498_v35 = vmul.f32 0.25, %v1494_v34  ;;  %v4205_v36 = vpop.f32.mrb[3].mxu0 }
 0x652   : > { %v1505_v37 = vadd.f32 %v5162_v32, %v1498_v35 }
 0x654   : > { %v1507_v38 = vsel %vm1506_vm4, %v1505_v37, -inf }
 0x655   : > { %1508 = vmax.xlane.f32.xlu1 %v1507_v38 }
 0x6e2   : > { %v1509_v39 = vpop.xlane.xlu1 %1508 }
 0x6e3   : > { %v1510_v40 = vsub.f32 %v1505_v37, %v1509_v39 }
 0x6e5   : > { %v1511_v41 = vmul.f32 1.442695, %v1510_v40 }
 0x6e7   : > { %4649 = vpow2.f32 %v1511_v41  ;;  %v1946_v41 = vld [vmem:[%s4876_s30 + $0x8] sm:$0xff] }
 0x6f1   : > { %v4650_v28 = vpop.eup %4649 }
 0x6f2   : > { %v1513_v42 = vsel %vm1506_vm4, %v4650_v28, 0.0 }
 0x6f3   : > { %1514 = vadd.xlane.f32.xlu0 %v1513_v42  ;;  %v1947_v42 = vld [vmem:[%s4876_s30 + $0x10] sm:$0xff] }
 0x709   : > { %1518 = vrot.lane.b32.xlu0 %v5146_v17, %s5506_s22  ;;  %s5561_s22 = sld [smem:[#allocation21_spill]] }
 0x70d   : > { %1678 = vrot.lane.b32.xlu0 %v5146_v17, %s5504_s23 }
 0x711   : > { %1676 = vrot.lane.b32.xlu0 %v5146_v17, %s5501_s16  ;;  %s5503_s16 = smov 48  }
 0x780   : > { %v1515_v43 = vpop.xlane.xlu0 %1514 }
 0x781   : > { %4651 = vrcp.f32 %v1515_v43  ;;  %v1948_v43 = vld [vmem:[%s4876_s30 + $0x18] sm:$0xff] }
 0x784   : > { %v1519_v44 = vpop.permute.xlu0 %1518 }
 0x785   : > { %4207 = vmatpush3.msra.mxu1 %v1519_v44  ;;  %v4471_v44 = vpack.c.bf16 %v1948_v43, %v1947_v42 }
 0x786   : > { %4461 = vmatprep.subr.bf16.mxu1 %v4797_v4 }
 0x788   : > { %v1679_v50 = vpop.permute.xlu0 %1678 }
 0x78b   : > { %v4652_v47 = vpop.eup %4651 }
 0x78c   : > { %v1517_v49 = vmul.f32 %v4652_v47, %v4650_v28  ;;  %v1677_v54 = vpop.permute.xlu0 %1676 }
 0x78e   : > { %4209 = vmatmul.mubr.msk.f32.vlgmr.msra.gmra.mrb[2].mxu1 %vm1506_vm4, %v1517_v49  ;;  %v3979_v49 = vld [vmem:[%s4896_s27] ss:$0 sm:$0xff] }
 0x78f   : > { %4463 = vmatpush3.bf16.msra.mxu1 %v4462_v48  ;;  %4215 = vmatprep.mubr.msk.f32.mxu1 %vm4798_vm0, %v4799_v14 }
 0x790   : > { %4218 = vmatprep.subr.mxu1 %v4799_v14 }
 0x861   : > { %v1590_v52 = vpop.f32.mrb[2].mxu1 }
 0x862   : > { %v4210_v53 = vpop.f32.mrb[3].mxu1  ;;  %4216 = vmatmul.mubr.msk.f32.vlgmr.msra.gmra.mrb[4].mxu1 %vm1423_vm3, %v1590_v52  ;;  %v3980_v52 = vld [vmem:[%s4896_s27 + $0x1] ss:$0 sm:$0xff] }
 0x863   : > { %4219 = vmatpush3.xpose.msk.msra.mxu1 %vm1423_vm3, %v1679_v50  ;;  %4220 = vmatprep.mubr.msk.f32.mxu1 %vm4798_vm0, %v4799_v14 }
 0x864   : > { %4223 = vmatprep.subr.mxu1 %v4799_v14 }
 0x866   : > { %4221 = vmatmul.mubr.msk.f32.vlgmr.msra.gmra.mrb[6].mxu1 %vm1423_vm3, %v1677_v54 }
 0x867   : > { %4225 = vmatprep.mubr.msk.f32.mxu1 %vm4798_vm0, %v4799_v14 }
 0x935   : > { %v1665_v55 = vpop.f32.mrb[4].mxu1 }
 0x936   : > { %v4217_v56 = vpop.f32.mrb[5].mxu1  ;;  %v1675_v20 = vadd.f32 %v3974_v19, %v1665_v55 }
 0x937   : > { %v2062_v56 = vld [vmem:[%s5549_s12 + $0x30] sm:$0xff] }
 0x939   : > { %v1750_v57 = vpop.f32.mrb[6].mxu1 }
 0x93a   : > { %v1754_v58 = vmul.f32 0.25, %v1750_v57  ;;  %v4222_v59 = vpop.f32.mrb[7].mxu1  ;;  %v2063_v57 = vld [vmem:[%s5549_s12 + $0x38] sm:$0xff] }
 0x93c   : > { %v1755_v60 = vadd.f32 %v1754_v58, %v5162_v32  ;;  %v4483_v58 = vpack.c.bf16 %v2063_v57, %v2062_v56 }
 0x93e   : > { %v1756_v61 = vsel %vm1506_vm4, %v1755_v60, -inf }
 0x93f   : > { %1757 = vmax.xlane.f32.xlu1 %v1756_v61 }
 0x950   : > { %1767 = vrot.lane.b32.xlu1 %v5146_v17, %s5503_s16  ;;  %s5557_s16 = sshll.u32 %s5060_s2, 3 }
 0x951   : > { %s1160_s23 = scalar_lea.vmem %s5556_s9, %s5557_s16  ;;  %s5558_s16 = sld [smem:[#allocation12_spill]] }
 0x952   : > { %v2171_v40 = vld [vmem:[%s1160_s23] sm:$0xff]  ;;  %s5559_s23 = sld [smem:[#allocation16_spill]]  ;;  %s1166_s9 = scalar_lea.vmem %s5563_s5, %s5060_s2 }
 0x953   : > { %s5566_s5 = smov 64   ;;  %s5568_s2 = smov 112  }
 0x957   : > { %v3981_v59 = vld [vmem:[%s5558_s16] ss:$0 sm:$0xff]  ;;  %s5560_s16 = sld [smem:[#allocation17_spill]] }
 0x9cc   : > { %v1758_v62 = vpop.xlane.xlu1 %1757 }
 0x9cd   : > { %v1759_v63 = vsub.f32 %v1755_v60, %v1758_v62 }
 0x9cf   : > { %v1760_v0 = vmul.f32 1.442695, %v1759_v63 }
 0x9d0   : > { %v1768_v1 = vpop.permute.xlu1 %1767 }
 0x9d1   : > { %4653 = vpow2.f32 %v1760_v0  ;;  %4224 = vmatpush3.msra.mxu1 %v1768_v1 }
 0x9d2   : > { %4464 = vmatprep.subr.bf16.mxu1 %v4797_v4 }
 0x9db   : > { %v4654_v2 = vpop.eup %4653 }
 0x9dc   : > { %v1762_v3 = vsel %vm1506_vm4, %v4654_v2, 0.0 }
 0x9dd   : > { %1763 = vadd.xlane.f32.xlu0 %v1762_v3 }
 0xa6a   : > { %v1764_v6 = vpop.xlane.xlu0 %1763 }
 0xa6b   : > { %4655 = vrcp.f32 %v1764_v6 }
 0xa75   : > { %v4656_v10 = vpop.eup %4655 }
 0xa76   : > { %v1766_v13 = vmul.f32 %v4656_v10, %v4654_v2 }
 0xa78   : > { %4226 = vmatmul.mubr.msk.f32.vlgmr.msra.gmra.mrb[8].mxu1 %vm1506_vm4, %v1766_v13 }
 0xa79   : > { %4466 = vmatpush3.bf16.msra.mxu1 %v4465_v12  ;;  %4232 = vmatprep.mubr.msk.f32.mxu1 %vm4798_vm0, %v4799_v14 }
 0xa7a   : > { %4473 = vmatprep.subr.bf16.mxu1 %v4797_v4 }
 0xb4b   : > { %v1839_v16 = vpop.f32.mrb[8].mxu1 }
 0xb4c   : > { %v4227_v17 = vpop.f32.mrb[9].mxu1  ;;  %4233 = vmatmul.mubr.msk.f32.vlgmr.msra.gmra.mrb[10].mxu1 %vm1423_vm3, %v1839_v16 }
 0xb4d   : > { %4262 = vmatprep.mubr.msk.f32.mxu1 %vm4798_vm0, %v4799_v14 }
 0xc1f   : > { %v1914_v22 = vpop.f32.mrb[10].mxu1 }
 0xc20   : > { %v1918_v23 = vadd.f32 %v1914_v22, %v1675_v20  ;;  %v4234_v26 = vpop.f32.mrb[11].mxu1 }
 0xc22   : > { %v5205_v30 = vadd.f32 %v1918_v23, %v5128_v51  ;;  %v1945_v51 = vld [vmem:[%s4876_s30] sm:$0xff] }
 0xc23   : > { %v4468_v28 = vpack.c.bf16 %v1946_v41, %v1945_v51  ;;  %v4806_v51 = vmov -1.0  }
 0xc24   : > { %v1922_v34 = vsel %vm1285_vm2, %v5205_v30, 0.0 }
 0xc25   : > { %1923 = vadd.xlane.f32.xlu1 %v1922_v34  ;;  %4469 = vmatpush3.bf16.msra.mxu0 %v4468_v28 }
 0xc26   : > { %4470 = vmatprep.subr.bf16.mxu0 %v4797_v4 }
 0xc29   : > { %4472 = vmatpush3.bf16.msra.mxu0 %v4471_v44 }
 0xc2a   : > { %4485 = vmatprep.subr.bf16.mxu0 %v4797_v4 }
 0xcb2   : > { %v1924_v35 = vpop.xlane.xlu1 %1923 }
 0xcb3   : > { %v1925_v36 = vmul.f32 0.03125, %v1924_v35 }
 0xcb5   : > { %v1926_v37 = vsub.f32 %v5205_v30, %v1925_v36 }
 0xcb7   : > { %v1927_v38 = vmul.f32 %v1926_v37, %v1926_v37 }
 0xcb9   : > { %v1928_v39 = vsel %vm1285_vm2, %v1927_v38, 0.0 }
 0xcba   : > { %1929 = vadd.xlane.f32.xlu0 %v1928_v39 }
 0xcd0   : > { %2173 = vperm.xlu0 %4644, %v2171_v40  }
 0xd47   : > { %v1930_v45 = vpop.xlane.xlu0 %1929 }
 0xd48   : > { %v1931_v46 = vmul.f32 0.03125, %v1930_v45 }
 0xd4a   : > { %v1932_v47 = vadd.f32 1e-05, %v1931_v46 }
 0xd4c   : > { %4657 = vrsqrt.f32 %v1932_v47 }
 0xd56   : > { %v4658_v48 = vpop.eup %4657 }
 0xd57   : > { %v1934_v50 = vmul.f32 %v4658_v48, %v1926_v37 }
 0xd59   : > { %v1939_v53 = vmul.f32 %v3979_v49, %v1934_v50 }
 0xd5b   : > { %v1944_v54 = vadd.f32 %v3980_v52, %v1939_v53 }
 0xd5d   : > { %4244 = vmatmul.mubr.msk.f32.vlgmr.msra.gmra.mrb[4].mxu0 %vm1285_vm2, %v1944_v54 }
 0xd5e   : > { %4487 = vmatpush3.bf16.msra.mxu0 %v5056_v5  ;;  %4297 = vmatprep.mubr.msk.f32.mxu0 %vm4798_vm0, %v4799_v14  ;;  %v2174_v5 = vpop.permute.xlu0 %2173 }
 0xd5f   : > { %4488 = vmatprep.subr.bf16.mxu0 %v4797_v4  ;;  %vm2175_vm5 = vcmp.eq.s32.totalorder %v5114_v29, %v2174_v5 }
 0xd62   : > { %4490 = vmatpush3.bf16.msra.mxu0 %v5064_v7  ;;  %v2056_v7 = vld [vmem:[%s5549_s12] sm:$0xff] }
 0xd63   : > { %4491 = vmatprep.subr.bf16.mxu0 %v4797_v4 }
 0xd66   : > { %4493 = vmatpush3.bf16.msra.mxu0 %v5074_v11  ;;  %v2057_v11 = vld [vmem:[%s5549_s12 + $0x8] sm:$0xff] }
 0xd67   : > { %4494 = vmatprep.subr.bf16.mxu0 %v4797_v4 }
 0xd6a   : > { %4496 = vmatpush3.bf16.msra.mxu0 %v5084_v15  ;;  %v4474_v15 = vpack.c.bf16 %v2057_v11, %v2056_v7  ;;  %v3989_v7 = vld [vmem:[%s5559_s23] ss:$0 sm:$0xff] }
 0xd6b   : > { %4497 = vmatprep.subr.bf16.mxu0 %v4797_v4 }
 0xd6c   : > { %4475 = vmatpush3.bf16.msra.mxu1 %v4474_v15  ;;  %v3990_v15 = vld [vmem:[%s5559_s23 + $0x1] ss:$0 sm:$0xff] }
 0xd6d   : > { %4476 = vmatprep.subr.bf16.mxu1 %v4797_v4 }
 0xd6e   : > { %4499 = vmatpush3.bf16.msra.mxu0 %v5090_v18  ;;  %v2058_v18 = vld [vmem:[%s5549_s12 + $0x10] sm:$0xff] }
 0xd6f   : > { %4500 = vmatprep.subr.bf16.mxu0 %v4797_v4 }
 0xd72   : > { %4502 = vmatpush3.bf16.msra.mxu0 %v5096_v21  ;;  %v2059_v21 = vld [vmem:[%s5549_s12 + $0x18] sm:$0xff] }
 0xd73   : > { %4503 = vmatprep.subr.bf16.mxu0 %v4797_v4 }
 0xd76   : > { %4505 = vmatpush3.bf16.msra.mxu0 %v5102_v24  ;;  %v4477_v24 = vpack.c.bf16 %v2059_v21, %v2058_v18 }
 0xd77   : > { %4506 = vmatprep.subr.bf16.mxu0 %v4797_v4 }
 0xd78   : > { %4478 = vmatpush3.bf16.msra.mxu1 %v4477_v24 }
 0xd79   : > { %4479 = vmatprep.subr.bf16.mxu1 %v4797_v4 }
 0xd7a   : > { %4508 = vmatpush3.bf16.msra.mxu0 %v5108_v27  ;;  %v2060_v27 = vld [vmem:[%s5549_s12 + $0x20] sm:$0xff] }
 0xd7b   : > { %4333 = vmatprep.subr.mxu0 %v4799_v14 }
 0xd7d   : > { %4298 = vmatmul.mubr.msk.f32.vlgmr.msra.gmra.mrb[6].mxu0 %vm2175_vm5, %v4800_v31  ;;  %v2061_v31 = vld [vmem:[%s5549_s12 + $0x28] sm:$0xff]  ;;  %s5570_s12 = smov 48  }
 0xd7e   : > { %4335 = vmatprep.mubr.msk.f32.mxu0 %vm4798_vm0, %v4799_v14  ;;  %v4480_v55 = vpack.c.bf16 %v2061_v31, %v2060_v27 }
 0xd80   : > { %4481 = vmatpush3.bf16.msra.mxu1 %v4480_v55 }
 0xd81   : > { %4482 = vmatprep.subr.bf16.mxu1 %v4797_v4 }
 0xd84   : > { %4484 = vmatpush3.bf16.msra.mxu1 %v4483_v58  ;;  %v2300_v58 = vld [vmem:[%s5560_s16] sm:$0xff] }
 0xd85   : > { %4509 = vmatprep.subr.bf16.mxu1 %v4797_v4 }
 0xe30   : > { %v2025_v60 = vpop.f32.mrb[4].mxu0 }
 0xe31   : > { %v2026_v61 = vadd.f32 %v3981_v59, %v2025_v60  ;;  %v4245_v62 = vpop.f32.mrb[5].mxu0  ;;  %v2301_v59 = vld [vmem:[%s5560_s16 + $0x8] sm:$0xff] }
 0xe32   : > { %v4510_v60 = vpack.c.bf16 %v2301_v59, %v2300_v58  ;;  %v2303_v62 = vld [vmem:[%s5560_s16 + $0x18] sm:$0xff] }
 0xe33   : > { %v2030_v63 = vmul.f32 0.70710677, %v2026_v61  ;;  %v2029_v42 = vmul.f32 0.5, %v2026_v61  ;;  %v2302_v61 = vld [vmem:[%s5560_s16 + $0x10] sm:$0xff] }
 0xe35   : > { %v2033_v0 = vand.u32 2147483647, %v2030_v63  ;;  %vm2031_vm6 = vcmp.ge.f32.partialorder %v2030_v63, 0.0  ;;  %v4513_v63 = vpack.c.bf16 %v2303_v62, %v2302_v61 }
 0xe36   : > { %v2032_v41 = vsel %vm2031_vm6, 1.0, %v4806_v51 }
 0xe37   : > { %v2034_v1 = vmul.f32 0.3275911, %v2033_v0  ;;  %v2047_v3 = vmul.f32 %v2033_v0, %v2033_v0 }
 0xe39   : > { %v2035_v2 = vadd.f32 1.0, %v2034_v1  ;;  %v2048_v8 = vsub.f32 0.0, %v2047_v3 }
 0xe3b   : > { %4659 = vrcp.f32 %v2035_v2  ;;  %v2049_v12 = vmul.f32 1.442695, %v2048_v8 }
 0xe3d   : > { %4661 = vpow2.f32 %v2049_v12 }
 0xe45   : > { %v4660_v6 = vpop.eup %4659 }
 0xe46   : > { %v2038_v9 = vmul.f32 1.0614054, %v4660_v6 }
 0xe47   : > { %v4662_v38 = vpop.eup %4661 }
 0xe48   : > { %v2039_v10 = vadd.f32 -1.4531521, %v2038_v9  ;;  %v3992_v9 = vld [vmem:[%s5561_s22 + $0x1] ss:$0 sm:$0xff] }
 0xe4a   : > { %v2040_v13 = vmul.f32 %v4660_v6, %v2039_v10 }
 0xe4c   : > { %v2041_v16 = vadd.f32 1.4214138, %v2040_v13  ;;  %v3993_v13 = vld [vmem:[%s5562_s3] ss:$0 sm:$0xff]  ;;  %s5565_s3 = sld [smem:[#allocation19_spill]] }
 0xe4e   : > { %v2042_v17 = vmul.f32 %v4660_v6, %v2041_v16 }
 0xe50   : > { %v2043_v19 = vadd.f32 -0.28449672, %v2042_v17  ;;  %v2244_v20 = vpop.f32.mrb[6].mxu0 }
 0xe51   : > { %v2248_v22 = vmul.f32 5.656854, %v2244_v20  ;;  %v4299_v23 = vpop.f32.mrb[7].mxu0 }
 0xe52   : > { %v2044_v26 = vmul.f32 %v4660_v6, %v2043_v19  ;;  %v3960_v23 = vsel %vm1175_vm8, 1.0, %v4799_v14 }
 0xe53   : > { %v2249_v34 = vadd.f32 %v2248_v22, %v5121_v33  ;;  %v3961_v22 = vld [vmem:[%s1166_s9] ss:$0 sm:$0xff]  ;;  %s5567_s9 = smov 80  }
 0xe54   : > { %v2045_v35 = vadd.f32 0.2548296, %v2044_v26  ;;  %v1184_v26 = vmul.f32 %v3961_v22, %v3960_v23 }
 0xe55   : > { %v2252_v36 = vsel %vm1285_vm2, %v2249_v34, 0.0 }
 0xe56   : > { %v2046_v37 = vmul.f32 %v4660_v6, %v2045_v35  ;;  %2253 = vadd.xlane.f32.xlu1 %v2252_v36  ;;  %v3991_v6 = vld [vmem:[%s5561_s22] ss:$0 sm:$0xff] }
 0xe58   : > { %v2051_v39 = vmul.f32 %v4662_v38, %v2046_v37 }
 0xe5a   : > { %v2052_v40 = vsub.f32 1.0, %v2051_v39 }
 0xe5c   : > { %v2053_v28 = vmul.f32 %v2052_v40, %v2032_v41 }
 0xe5e   : > { %v2054_v43 = vadd.f32 1.0, %v2053_v28 }
 0xe60   : > { %v2055_v44 = vmul.f32 %v2054_v43, %v2029_v42 }
 0xe62   : > { %4263 = vmatmul.mubr.msk.f32.vlgmr.msra.gmra.mrb[12].mxu1 %vm2071_vm7, %v2055_v44 }
 0xe63   : > { %4308 = vmatprep.mubr.msk.f32.mxu1 %vm4798_vm0, %v4799_v14  ;;  %4511 = vmatpush3.bf16.msra.mxu1 %v4510_v60 }
 0xe64   : > { %4512 = vmatprep.subr.bf16.mxu1 %v4797_v4 }
 0xe67   : > { %4514 = vmatpush3.bf16.msra.mxu1 %v4513_v63 }
 0xe68   : > { %4311 = vmatprep.subr.mxu1 %v4799_v14 }
 0xee3   : > { %v2254_v33 = vpop.xlane.xlu1 %2253 }
 0xee4   : > { %v2255_v45 = vmul.f32 0.03125, %v2254_v33  ;;  %v2551_v33 = vld [vmem:[%s5565_s3] sm:$0xff] }
 0xee6   : > { %v2256_v46 = vsub.f32 %v2249_v34, %v2255_v45  ;;  %v1185_v34 = vsub.f32 1.0, %v1184_v26  ;;  %v2552_v45 = vld [vmem:[%s5565_s3 + $0x8] sm:$0xff] }
 0xee8   : > { %v2257_v47 = vmul.f32 %v2256_v46, %v2256_v46  ;;  %v1186_v35 = vmul.f32 -1e+09, %v1185_v34 }
 0xeea   : > { %v2258_v48 = vsel %vm1285_vm2, %v2257_v47, 0.0  ;;  %v4516_v47 = vpack.c.bf16 %v2552_v45, %v2551_v33 }
 0xeeb   : > { %2259 = vadd.xlane.f32.xlu0 %v2258_v48 }
 0xf35   : > { %v5265_v49 = vpop.f32.mrb[12].mxu1 }
 0xf36   : > { %v4264_v50 = vpop.f32.mrb[13].mxu1 }
 0xf78   : > { %v2260_v52 = vpop.xlane.xlu0 %2259 }
 0xf79   : > { %v2261_v53 = vmul.f32 0.03125, %v2260_v52 }
 0xf7b   : > { %v2262_v54 = vadd.f32 1e-05, %v2261_v53 }
 0xf7d   : > { %4663 = vrsqrt.f32 %v2262_v54 }
 0xf87   : > { %v4664_v5 = vpop.eup %4663 }
 0xf88   : > { %v2264_v11 = vmul.f32 %v4664_v5, %v2256_v46 }
 0xf8a   : > { %v2269_v18 = vmul.f32 %v3989_v7, %v2264_v11 }
 0xf8c   : > { %v5269_v21 = vadd.f32 %v3990_v15, %v2269_v18 }
 0xf8e   : > { %v2277_v24 = vsel %vm1285_vm2, %v5269_v21, 0.0 }
 0xf8f   : > { %2278 = vadd.xlane.f32.xlu1 %v2277_v24 }
0x101c   : > { %v2279_v27 = vpop.xlane.xlu1 %2278 }
0x101d   : > { %v2280_v31 = vmul.f32 0.03125, %v2279_v27 }
0x101f   : > { %v2281_v55 = vsub.f32 %v5269_v21, %v2280_v31 }
0x1021   : > { %v2282_v56 = vmul.f32 %v2281_v55, %v2281_v55 }
0x1023   : > { %v2283_v57 = vsel %vm1285_vm2, %v2282_v56, 0.0 }
0x1024   : > { %2284 = vadd.xlane.f32.xlu1 %v2283_v57 }
0x10b1   : > { %v2285_v0 = vpop.xlane.xlu1 %2284 }
0x10b2   : > { %v2286_v1 = vmul.f32 0.03125, %v2285_v0  ;;  %v2800_v0 = vld [vmem:[%s5565_s3 + $0x10] sm:$0xff] }
0x10b4   : > { %v2287_v2 = vadd.f32 1e-05, %v2286_v1 }
0x10b6   : > { %4665 = vrsqrt.f32 %v2287_v2 }
0x10c0   : > { %v4666_v3 = vpop.eup %4665 }
0x10c1   : > { %v2289_v8 = vmul.f32 %v4666_v3, %v2281_v55 }
0x10c3   : > { %v2294_v10 = vmul.f32 %v3991_v6, %v2289_v8 }
0x10c5   : > { %v2299_v12 = vadd.f32 %v3992_v9, %v2294_v10 }
0x10c7   : > { %4309 = vmatmul.mubr.msk.f32.vlgmr.msra.gmra.mrb[14].mxu1 %vm1285_vm2, %v2299_v12 }
0x10c8   : > { %4313 = vmatprep.mubr.msk.f32.mxu1 %vm4798_vm0, %v4799_v14 }
0x119a   : > { %v2380_v16 = vpop.f32.mrb[14].mxu1 }
0x119b   : > { %v2381_v17 = vadd.f32 %v3993_v13, %v2380_v16  ;;  %v4310_v19 = vpop.f32.mrb[15].mxu1 }
0x119d   : > { %2386 = vrot.lane.b32.xlu1 %v2381_v17, %s5564_s8 }
0x120f   : > { %v2387_v20 = vpop.permute.xlu1 %2386 }
0x1210   : > { %4312 = vmatpush3.xpose.msk.msra.mxu1 %vm1423_vm3, %v2387_v20 }
0x1211   : > { %4316 = vmatprep.subr.mxu1 %v4799_v14 }
0x1213   : > { %4314 = vmatmul.mubr.msk.f32.vlgmr.msra.gmra.mrb[16].mxu1 %vm1423_vm3, %v2381_v17 }
0x1214   : > { %4318 = vmatprep.mubr.msk.f32.mxu1 %vm4798_vm0, %v4799_v14 }
0x12e6   : > { %v2458_v36 = vpop.f32.mrb[16].mxu1 }
0x12e7   : > { %v2462_v37 = vmul.f32 0.25, %v2458_v36  ;;  %v4315_v38 = vpop.f32.mrb[17].mxu1 }
0x12e9   : > { %v2463_v39 = vadd.f32 %v2462_v37, %v1186_v35 }
0x12eb   : > { %v2464_v40 = vsel %vm1506_vm4, %v2463_v39, -inf }
0x12ec   : > { %2465 = vmax.xlane.f32.xlu1 %v2464_v40 }
0x1379   : > { %v2466_v41 = vpop.xlane.xlu1 %2465 }
0x137a   : > { %v2467_v28 = vsub.f32 %v2463_v39, %v2466_v41 }
0x137c   : > { %v2468_v42 = vmul.f32 1.442695, %v2467_v28 }
0x137e   : > { %4667 = vpow2.f32 %v2468_v42 }
0x1388   : > { %v4668_v29 = vpop.eup %4667 }
0x1389   : > { %v2470_v25 = vsel %vm1506_vm4, %v4668_v29, 0.0 }
0x138a   : > { %2471 = vadd.xlane.f32.xlu0 %v2470_v25 }
0x13a0   : > { %2475 = vrot.lane.b32.xlu0 %v2381_v17, %s5566_s5  ;;  %s5569_s5 = sld [smem:[#allocation14_spill]] }
0x13a4   : > { %2635 = vrot.lane.b32.xlu0 %v2381_v17, %s5567_s9 }
0x13a6   : > { %v3983_v31 = vld [vmem:[%s5569_s5] ss:$0 sm:$0xff]  ;;  %s5572_s5 = sld [smem:[#allocation24_spill]] }
0x13a7   : > { %v2142_v55 = vadd.f32 %v3983_v31, %v5265_v49  ;;  %v2801_v49 = vld [vmem:[%s5565_s3 + $0x18] sm:$0xff]  ;;  %s5574_s3 = sld [smem:[#allocation22_spill]] }
0x13a8   : > { %2633 = vrot.lane.b32.xlu0 %v2381_v17, %s5568_s2  ;;  %v4519_v1 = vpack.c.bf16 %v2801_v49, %v2800_v0 }
0x13a9   : > { %v2145_v56 = vadd.f32 %v2142_v55, %v5205_v30 }
0x13ab   : > { %v2148_v57 = vsel %vm1285_vm2, %v2145_v56, 0.0 }
0x13ac   : > { %v2987_v36 = vld [vmem:[%s5572_s5 + $0x8] sm:$0xff]  ;;  %v2988_v38 = vld [vmem:[%s5572_s5 + $0x10] sm:$0xff]  ;;  %v2989_v39 = vld [vmem:[%s5572_s5 + $0x18] sm:$0xff] }
0x13ad   : > { %v4531_v40 = vpack.c.bf16 %v2989_v39, %v2988_v38 }
0x1417   : > { %v2472_v43 = vpop.xlane.xlu0 %2471 }
0x1418   : > { %4669 = vrcp.f32 %v2472_v43 }
0x141b   : > { %v2476_v44 = vpop.permute.xlu0 %2475 }
0x141c   : > { %4317 = vmatpush3.msra.mxu1 %v2476_v44 }
0x141d   : > { %4515 = vmatprep.subr.bf16.mxu1 %v4797_v4 }
0x141f   : > { %v2636_v50 = vpop.permute.xlu0 %2635 }
0x1422   : > { %v4670_v46 = vpop.eup %4669 }
0x1423   : > { %v2474_v48 = vmul.f32 %v4670_v46, %v4668_v29  ;;  %v2634_v54 = vpop.permute.xlu0 %2633 }
0x1425   : > { %4319 = vmatmul.mubr.msk.f32.vlgmr.msra.gmra.mrb[18].mxu1 %vm1506_vm4, %v2474_v48 }
0x1426   : > { %4517 = vmatpush3.bf16.msra.mxu1 %v4516_v47  ;;  %4325 = vmatprep.mubr.msk.f32.mxu1 %vm4798_vm0, %v4799_v14 }
0x1427   : > { %4328 = vmatprep.subr.mxu1 %v4799_v14 }
0x14f8   : > { %v2547_v52 = vpop.f32.mrb[18].mxu1 }
0x14f9   : > { %v4320_v53 = vpop.f32.mrb[19].mxu1  ;;  %4326 = vmatmul.mubr.msk.f32.vlgmr.msra.gmra.mrb[20].mxu1 %vm1423_vm3, %v2547_v52  ;;  %v2902_v52 = vld [vmem:[%s5574_s3] sm:$0xff] }
0x14fa   : > { %4329 = vmatpush3.xpose.msk.msra.mxu1 %vm1423_vm3, %v2636_v50  ;;  %4330 = vmatprep.mubr.msk.f32.mxu1 %vm4798_vm0, %v4799_v14  ;;  %v2903_v53 = vld [vmem:[%s5574_s3 + $0x8] sm:$0xff] }
0x14fb   : > { %4518 = vmatprep.subr.bf16.mxu1 %v4797_v4 }
0x14fd   : > { %4331 = vmatmul.mubr.msk.f32.vlgmr.msra.gmra.mrb[22].mxu1 %vm1423_vm3, %v2634_v54  ;;  %v4522_v54 = vpack.c.bf16 %v2903_v53, %v2902_v52 }
0x14fe   : > { %4342 = vmatprep.mubr.msk.f32.mxu1 %vm4798_vm0, %v4799_v14  ;;  %4520 = vmatpush3.bf16.msra.mxu1 %v4519_v1 }
0x14ff   : > { %4527 = vmatprep.subr.bf16.mxu1 %v4797_v4 }
0x15cc   : > { %v2622_v5 = vpop.f32.mrb[20].mxu1 }
0x15cd   : > { %v4327_v7 = vpop.f32.mrb[21].mxu1 }
0x15ce   : > { %v2905_v7 = vld [vmem:[%s5574_s3 + $0x18] sm:$0xff] }
0x15d0   : > { %v2707_v11 = vpop.f32.mrb[22].mxu1 }
0x15d1   : > { %v2711_v15 = vmul.f32 0.25, %v2707_v11  ;;  %v4332_v18 = vpop.f32.mrb[23].mxu1 }
0x15d3   : > { %v2712_v24 = vadd.f32 %v2711_v15, %v1186_v35  ;;  %v2986_v35 = vld [vmem:[%s5572_s5] sm:$0xff]  ;;  %s5575_s5 = sld [smem:[#allocation28_spill]] }
0x15d4   : > { %v4528_v37 = vpack.c.bf16 %v2987_v36, %v2986_v35 }
0x15d5   : > { %v2713_v27 = vsel %vm1506_vm4, %v2712_v24, -inf }
0x15d6   : > { %2714 = vmax.xlane.f32.xlu1 %v2713_v27 }
0x15d9   : > { %v4004_v31 = vld [vmem:[%s5575_s5] ss:$0 sm:$0xff] }
0x15e7   : > { %2724 = vrot.lane.b32.xlu1 %v2381_v17, %s5570_s12  ;;  %s5571_s12 = sld [smem:[#allocation20_spill]] }
0x15ed   : > { %v3999_v10 = vld [vmem:[%s5571_s12] ss:$0 sm:$0xff]  ;;  %s5573_s12 = sld [smem:[#allocation15_spill]] }
0x15ee   : > { %v2632_v13 = vadd.f32 %v3999_v10, %v2622_v5  ;;  %v2904_v5 = vld [vmem:[%s5574_s3 + $0x10] sm:$0xff] }
0x15ef   : > { %v4525_v11 = vpack.c.bf16 %v2905_v7, %v2904_v5 }
0x15f3   : > { %v3985_v45 = vld [vmem:[%s5573_s12] ss:$0 sm:$0xff]  ;;  %v3986_v47 = vld [vmem:[%s5573_s12 + $0x1] ss:$0 sm:$0xff]  ;;  %s5577_s12 = sld [smem:[#allocation23_spill]] }
0x160b   : > { %2149 = vadd.xlane.f32.xlu1 %v2148_v57 }
0x1663   : > { %v2715_v58 = vpop.xlane.xlu1 %2714 }
0x1664   : > { %v2716_v59 = vsub.f32 %v2712_v24, %v2715_v58 }
0x1666   : > { %v2717_v60 = vmul.f32 1.442695, %v2716_v59  ;;  %v4008_v59 = vld [vmem:[%s5576_s13] ss:$0 sm:$0xff]  ;;  %s5578_s13 = sld [smem:[#allocation26_spill]] }
0x1667   : > { %v2725_v61 = vpop.permute.xlu1 %2724 }
0x1668   : > { %4671 = vpow2.f32 %v2717_v60  ;;  %4334 = vmatpush3.msra.mxu0 %v2725_v61 }
0x1669   : > { %4521 = vmatprep.subr.bf16.mxu0 %v4797_v4 }
0x1672   : > { %v4672_v62 = vpop.eup %4671 }
0x1673   : > { %v2719_v63 = vsel %vm1506_vm4, %v4672_v62, 0.0 }
0x1674   : > { %2720 = vadd.xlane.f32.xlu0 %v2719_v63  ;;  %v4006_v63 = vld [vmem:[%s5577_s12] ss:$0 sm:$0xff]  ;;  %s5582_s12 = sld [smem:[#allocation30_spill]] }
0x1698   : > { %v2150_v9 = vpop.xlane.xlu1 %2149 }
0x1699   : > { %v2151_v12 = vmul.f32 0.03125, %v2150_v9 }
0x169b   : > { %v2152_v17 = vsub.f32 %v2145_v56, %v2151_v12  ;;  %v4005_v56 = vld [vmem:[%s5575_s5 + $0x1] ss:$0 sm:$0xff] }
0x169d   : > { %v2153_v26 = vmul.f32 %v2152_v17, %v2152_v17 }
0x169f   : > { %v2154_v34 = vsel %vm1285_vm2, %v2153_v26, 0.0 }
0x1701   : > { %v2721_v30 = vpop.xlane.xlu0 %2720 }
0x1702   : > { %4673 = vrcp.f32 %v2721_v30 }
0x170c   : > { %v4674_v2 = vpop.eup %4673 }
0x170d   : > { %v2723_v3 = vmul.f32 %v4674_v2, %v4672_v62 }
0x170f   : > { %4336 = vmatmul.mubr.msk.f32.vlgmr.msra.gmra.mrb[8].mxu0 %vm1506_vm4, %v2723_v3 }
0x1710   : > { %4353 = vmatprep.mubr.msk.f32.mxu0 %vm4798_vm0, %v4799_v14  ;;  %4523 = vmatpush3.bf16.msra.mxu0 %v4522_v54 }
0x1711   : > { %4524 = vmatprep.subr.bf16.mxu0 %v4797_v4 }
0x1714   : > { %4526 = vmatpush3.bf16.msra.mxu0 %v4525_v11 }
0x1715   : > { %4367 = vmatprep.subr.mxu0 %v4799_v14 }
0x17e2   : > { %v2796_v6 = vpop.f32.mrb[8].mxu0 }
0x17e3   : > { %v4337_v8 = vpop.f32.mrb[9].mxu0  ;;  %4343 = vmatmul.mubr.msk.f32.vlgmr.msra.gmra.mrb[24].mxu1 %vm1423_vm3, %v2796_v6 }
0x17e4   : > { %4364 = vmatprep.mubr.msk.f32.mxu1 %vm4798_vm0, %v4799_v14  ;;  %4529 = vmatpush3.bf16.msra.mxu1 %v4528_v37 }
0x17e5   : > { %4530 = vmatprep.subr.bf16.mxu1 %v4797_v4 }
0x17e8   : > { %4532 = vmatpush3.bf16.msra.mxu1 %v4531_v40 }
0x17e9   : > { %4372 = vmatprep.subr.mxu1 %v4799_v14 }
0x18b6   : > { %v2871_v16 = vpop.f32.mrb[24].mxu1 }
0x18b7   : > { %v2875_v19 = vadd.f32 %v2871_v16, %v2632_v13  ;;  %v4344_v20 = vpop.f32.mrb[25].mxu1 }
0x18b9   : > { %v5337_v22 = vadd.f32 %v2875_v19, %v5269_v21  ;;  %v3237_v19 = vld [vmem:[%s5578_s13 + $0x8] sm:$0xff] }
0x18bb   : > { %v2879_v23 = vsel %vm1285_vm2, %v5337_v22, 0.0 }
0x18bc   : > { %2880 = vadd.xlane.f32.xlu0 %v2879_v23 }
0x18c0   : > { %2155 = vadd.xlane.f32.xlu0 %v2154_v34 }
0x1949   : > { %v2881_v21 = vpop.xlane.xlu0 %2880 }
0x194a   : > { %v2882_v41 = vmul.f32 0.03125, %v2881_v21 }
0x194c   : > { %v2883_v28 = vsub.f32 %v5337_v22, %v2882_v41 }
0x194d   : > { %v2156_v42 = vpop.xlane.xlu0 %2155 }
0x194e   : > { %v2157_v29 = vmul.f32 0.03125, %v2156_v42  ;;  %v2884_v25 = vmul.f32 %v2883_v28, %v2883_v28 }
0x1950   : > { %v2158_v43 = vadd.f32 1e-05, %v2157_v29  ;;  %v2885_v44 = vsel %vm1285_vm2, %v2884_v25, 0.0 }
0x1951   : > { %2886 = vadd.xlane.f32.xlu0 %v2885_v44 }
0x1952   : > { %4675 = vrsqrt.f32 %v2158_v43 }
0x195c   : > { %v4676_v33 = vpop.eup %4675 }
0x195d   : > { %v2160_v46 = vmul.f32 %v4676_v33, %v2152_v17  ;;  %v3236_v17 = vld [vmem:[%s5578_s13] sm:$0xff] }
0x195e   : > { %v4534_v20 = vpack.c.bf16 %v3237_v19, %v3236_v17 }
0x195f   : > { %v2165_v48 = vmul.f32 %v3985_v45, %v2160_v46  ;;  %v3485_v46 = vld [vmem:[%s5578_s13 + $0x10] sm:$0xff] }
0x1961   : > { %v2170_v50 = vadd.f32 %v3986_v47, %v2165_v48  ;;  %v3486_v47 = vld [vmem:[%s5578_s13 + $0x18] sm:$0xff] }
0x1963   : > { %4365 = vmatmul.mubr.msk.f32.vlgmr.msra.gmra.mrb[26].mxu1 %vm1285_vm2, %v2170_v50 }
0x1964   : > { %4374 = vmatprep.mubr.msk.f32.mxu1 %vm4798_vm0, %v4799_v14 }
0x19de   : > { %v2887_v15 = vpop.xlane.xlu0 %2886 }
0x19df   : > { %v2888_v18 = vmul.f32 0.03125, %v2887_v15 }
0x19e1   : > { %v2889_v24 = vadd.f32 1e-05, %v2888_v18 }
0x19e3   : > { %4677 = vrsqrt.f32 %v2889_v24 }
0x19ed   : > { %v4678_v27 = vpop.eup %4677 }
0x19ee   : > { %v2891_v55 = vmul.f32 %v4678_v27, %v2883_v28 }
0x19f0   : > { %v2896_v57 = vmul.f32 %v4004_v31, %v2891_v55 }
0x19f2   : > { %v2901_v58 = vadd.f32 %v4005_v56, %v2896_v57 }
0x19f4   : > { %4354 = vmatmul.mubr.msk.f32.vlgmr.msra.gmra.mrb[10].mxu0 %vm1285_vm2, %v2901_v58 }
0x19f5   : > { %4369 = vmatprep.mubr.msk.f32.mxu0 %vm4798_vm0, %v4799_v14 }
0x1a36   : > { %v3066_v60 = vpop.f32.mrb[26].mxu1 }
0x1a37   : > { %v3067_v61 = vadd.f32 %v4008_v59, %v3066_v60  ;;  %v4366_v62 = vpop.f32.mrb[27].mxu1 }
0x1a39   : > { %3320 = vrot.lane.b32.xlu1 %v3067_v61, %s5568_s2  ;;  %4368 = vmatpush3.xpose.msk.msra.mxu0 %vm1423_vm3, %v3067_v61 }
0x1a3a   : > { %4533 = vmatprep.subr.bf16.mxu0 %v4797_v4 }
0x1aab   : > { %v3321_v36 = vpop.permute.xlu1 %3320 }
0x1ac7   : > { %v2982_v0 = vpop.f32.mrb[10].mxu0 }
0x1ac8   : > { %v2983_v49 = vadd.f32 %v4006_v63, %v2982_v0  ;;  %v4355_v1 = vpop.f32.mrb[11].mxu0 }
0x1aca   : > { %3318 = vrot.lane.b32.xlu1 %v2983_v49, %s5568_s2  ;;  %4370 = vmatmul.mubr.msk.f32.vlgmr.msra.gmra.mrb[12].mxu0 %vm1423_vm3, %v2983_v49  ;;  %s5581_s2 = sld [smem:[#allocation31_spill]] }
0x1acb   : > { %4381 = vmatprep.mubr.msk.f32.mxu0 %vm4798_vm0, %v4799_v14  ;;  %4535 = vmatpush3.bf16.msra.mxu0 %v4534_v20 }
0x1acc   : > { %4389 = vmatprep.subr.mxu0 %v4799_v14 }
0x1ad0   : > { %v3700_v17 = vld [vmem:[%s5581_s2 + $0x10] sm:$0xff]  ;;  %v3701_v19 = vld [vmem:[%s5581_s2 + $0x18] sm:$0xff] }
0x1ad1   : > { %v4549_v20 = vpack.c.bf16 %v3701_v19, %v3700_v17 }
0x1b3c   : > { %v3319_v37 = vpop.permute.xlu1 %3318 }
0x1b9d   : > { %v3143_v30 = vpop.f32.mrb[12].mxu0 }
0x1b9e   : > { %v3147_v2 = vmul.f32 0.25, %v3143_v30  ;;  %v4371_v3 = vpop.f32.mrb[13].mxu0 }
0x1b9f   : > { %v4019_v3 = vld [vmem:[%s4991_s20] ss:$0 sm:$0xff] }
0x1ba0   : > { %v3148_v6 = vadd.f32 %v3147_v2, %v5162_v32 }
0x1ba2   : > { %v3149_v8 = vsel %vm1506_vm4, %v3148_v6, -inf }
0x1ba3   : > { %3150 = vmax.xlane.f32.xlu0 %v3149_v8  ;;  %v4020_v8 = vld [vmem:[%s4991_s20 + $0x1] ss:$0 sm:$0xff] }
0x1c30   : > { %v3151_v9 = vpop.xlane.xlu0 %3150 }
0x1c31   : > { %v3152_v10 = vsub.f32 %v3148_v6, %v3151_v9 }
0x1c33   : > { %v3153_v12 = vmul.f32 1.442695, %v3152_v10 }
0x1c35   : > { %4679 = vpow2.f32 %v3153_v12  ;;  %v3698_v12 = vld [vmem:[%s5581_s2] sm:$0xff] }
0x1c3f   : > { %v4680_v13 = vpop.eup %4679 }
0x1c40   : > { %v3155_v16 = vsel %vm1506_vm4, %v4680_v13, 0.0 }
0x1c41   : > { %3156 = vadd.xlane.f32.xlu0 %v3155_v16 }
0x1c57   : > { %3160 = vrot.lane.b32.xlu0 %v3067_v61, %s5564_s8  ;;  %s5579_s8 = sld [smem:[#allocation27_spill]] }
0x1c5d   : > { %v4014_v11 = vld [vmem:[%s5579_s8] ss:$0 sm:$0xff]  ;;  %s1150_s8 = sand.u32 1, %s4749_s10  }
0x1c5e   : > { %s3814_s13 = scalar_lea.sflag [#allocation3], %s1150_s8 }
0x1cce   : > { %v3157_v23 = vpop.xlane.xlu0 %3156 }
0x1ccf   : > { %4681 = vrcp.f32 %v3157_v23  ;;  %v3702_v23 = vld [vmem:[%s5581_s2 + $0x20] sm:$0xff] }
0x1cd2   : > { %v3161_v26 = vpop.permute.xlu0 %3160 }
0x1cd3   : > { %4373 = vmatpush3.msra.mxu1 %v3161_v26  ;;  %v3703_v26 = vld [vmem:[%s5581_s2 + $0x28] sm:$0xff] }
0x1cd4   : > { %4384 = vmatprep.subr.mxu1 %v4799_v14 }
0x1cd9   : > { %v4682_v34 = vpop.eup %4681 }
0x1cda   : > { %v3159_v35 = vmul.f32 %v4682_v34, %v4680_v13  ;;  %v3699_v13 = vld [vmem:[%s5581_s2 + $0x8] sm:$0xff]  ;;  %v4552_v34 = vpack.c.bf16 %v3703_v26, %v3702_v23 }
0x1cdb   : > { %v4546_v16 = vpack.c.bf16 %v3699_v13, %v3698_v12 }
0x1cdc   : > { %4375 = vmatmul.mubr.msk.f32.vlgmr.msra.gmra.mrb[28].mxu1 %vm1506_vm4, %v3159_v35  ;;  %v3704_v35 = vld [vmem:[%s5581_s2 + $0x30] sm:$0xff] }
0x1cdd   : > { %4385 = vmatpush3.xpose.msk.msra.mxu1 %vm1423_vm3, %v3321_v36  ;;  %4386 = vmatprep.mubr.msk.f32.mxu1 %vm4798_vm0, %v4799_v14  ;;  %v3705_v36 = vld [vmem:[%s5581_s2 + $0x38] sm:$0xff]  ;;  %s4028_s2 = sshll.u32 %s5024_s0, 7  ;;  %s4807_s0 = smov [#allocation2]  }
0x1cde   : > { %4536 = vmatprep.subr.bf16.mxu1 %v4797_v4 }
0x1ce0   : > { %4387 = vmatmul.mubr.msk.f32.vlgmr.msra.gmra.mrb[30].mxu1 %vm1423_vm3, %v3319_v37  ;;  %v4555_v37 = vpack.c.bf16 %v3705_v36, %v3704_v35 }
0x1ce1   : > { %4398 = vmatprep.mubr.msk.f32.mxu1 %vm4798_vm0, %v4799_v14 }
0x1daf   : > { %v3232_v38 = vpop.f32.mrb[28].mxu1 }
0x1db0   : > { %v4376_v39 = vpop.f32.mrb[29].mxu1  ;;  %4382 = vmatmul.mubr.msk.f32.vlgmr.msra.gmra.mrb[14].mxu0 %vm1423_vm3, %v3232_v38  ;;  %v4021_v38 = vld [vmem:[%s5582_s12] ss:$0 sm:$0xff]  ;;  %s3957_s12 = sshll.u32 %s1150_s8, 3 }
0x1db1   : > { %4391 = vmatprep.mubr.msk.f32.mxu0 %vm4798_vm0, %v4799_v14  ;;  %s1152_s3 = scalar_lea.vmem [#allocation2], %s3957_s12  ;;  %s4699_s12 = sshll.u32 %s4807_s0, 4  ;;  %s4700_s12 = int_to_ptr.vmem [resolvable:$false] %s4699_s12 }
0x1db2   : > { %s3827_s5 = sshll.u32 %s1152_s3, 4  ;;  %s5449_s5 = int_to_ptr.vmem [resolvable:$true] %s3827_s5 }
0x1db3   : > { %v3392_v40 = vpop.f32.mrb[30].mxu1  ;;  %s4695_s14 = scalar_lea.vmem %s5449_s5, 128  ;;  %p4702_p0 = scmp.lt.s32.totalorder %s5449_s5, %s4700_s12 }
0x1db4   : > { %v3396_v21 = vmul.f32 0.25, %v3392_v40  ;;  %v4388_v41 = vpop.f32.mrb[31].mxu1  ;;  %p4696_p11 = scmp.ne.s32.totalorder %s5449_s5, %s4695_s14 }
0x1db6   : > { %v3397_v28 = vadd.f32 %v3396_v21, %v5162_v32  ;;  %v4537_v32 = vpack.c.bf16 %v3486_v47, %v3485_v46  ;;  %p4697_p12 = pnand %p4696_p11, %p5041_p5 }
0x1db8   : > { %v3398_v42 = vsel %vm1506_vm4, %v3397_v28, -inf  ;;  %4538 = vmatpush3.bf16.msra.mxu1 %v4537_v32  ;;  %p4698_p13 = pneg %p4697_p12 }
0x1db9   : > { %3399 = vmax.xlane.f32.xlu0 %v3398_v42  ;;  %4545 = vmatprep.subr.bf16.mxu1 %v4797_v4 }
0x1dcf   : > { %3409 = vrot.lane.b32.xlu0 %v3067_v61, %s5567_s9  ;;  %s5580_s9 = sld [smem:[#allocation29_spill]] }
0x1dd5   : > { %v3587_v60 = vld [vmem:[%s5580_s9] sm:$0xff]  ;;  %v3588_v61 = vld [vmem:[%s5580_s9 + $0x8] sm:$0xff]  ;;  %v3590_v63 = vld [vmem:[%s5580_s9 + $0x18] sm:$0xff] }
0x1dd6   : > { %v4540_v62 = vpack.c.bf16 %v3588_v61, %v3587_v60 }
0x1e46   : > { %v3400_v29 = vpop.xlane.xlu0 %3399 }
0x1e47   : > { %v3401_v25 = vsub.f32 %v3397_v28, %v3400_v29 }
0x1e49   : > { %v3402_v43 = vmul.f32 1.442695, %v3401_v25 }
0x1e4a   : > { %v3410_v44 = vpop.permute.xlu0 %3409 }
0x1e4b   : > { %4683 = vpow2.f32 %v3402_v43  ;;  %4390 = vmatpush3.msra.mxu0 %v3410_v44 }
0x1e4c   : > { %4539 = vmatprep.subr.bf16.mxu0 %v4797_v4 }
0x1e55   : > { %v4684_v33 = vpop.eup %4683 }
0x1e56   : > { %v3404_v45 = vsel %vm1506_vm4, %v4684_v33, 0.0 }
0x1e57   : > { %3405 = vadd.xlane.f32.xlu1 %v3404_v45 }
0x1e83   : > { %v3307_v48 = vpop.f32.mrb[14].mxu0 }
0x1e84   : > { %v4383_v50 = vpop.f32.mrb[15].mxu0  ;;  %v3317_v15 = vadd.f32 %v4014_v11, %v3307_v48 }
0x1ee4   : > { %v3406_v52 = vpop.xlane.xlu1 %3405 }
0x1ee5   : > { %4685 = vrcp.f32 %v3406_v52 }
0x1eef   : > { %v4686_v53 = vpop.eup %4685 }
0x1ef0   : > { %v3408_v54 = vmul.f32 %v4686_v53, %v4684_v33 }
0x1ef2   : > { %4392 = vmatmul.mubr.msk.f32.vlgmr.msra.gmra.mrb[16].mxu0 %vm1506_vm4, %v3408_v54 }
0x1ef3   : > { %4409 = vmatprep.mubr.msk.f32.mxu0 %vm4798_vm0, %v4799_v14  ;;  %4541 = vmatpush3.bf16.msra.mxu0 %v4540_v62 }
0x1ef4   : > { %4542 = vmatprep.subr.bf16.mxu0 %v4797_v4 }
0x1fc5   : > { %v3481_v5 = vpop.f32.mrb[16].mxu0 }
0x1fc6   : > { %v4393_v7 = vpop.f32.mrb[17].mxu0  ;;  %4399 = vmatmul.mubr.msk.f32.vlgmr.msra.gmra.mrb[32].mxu1 %vm1423_vm3, %v3481_v5 }
0x1fc7   : > { %4428 = vmatprep.mubr.msk.f32.mxu1 %vm4798_vm0, %v4799_v14  ;;  %4547 = vmatpush3.bf16.msra.mxu1 %v4546_v16 }
0x1fc8   : > { %4548 = vmatprep.subr.bf16.mxu1 %v4797_v4 }
0x1fcb   : > { %4550 = vmatpush3.bf16.msra.mxu1 %v4549_v20 }
0x1fcc   : > { %4551 = vmatprep.subr.bf16.mxu1 %v4797_v4 }
0x1fcf   : > { %4553 = vmatpush3.bf16.msra.mxu1 %v4552_v34 }
0x1fd0   : > { %4554 = vmatprep.subr.bf16.mxu1 %v4797_v4 }
0x1fd3   : > { %4556 = vmatpush3.bf16.msra.mxu1 %v4555_v37 }
0x2099   : > { %v3556_v18 = vpop.f32.mrb[32].mxu1 }
0x209a   : > { %v3560_v24 = vadd.f32 %v3556_v18, %v3317_v15  ;;  %v4400_v27 = vpop.f32.mrb[33].mxu1 }
0x209c   : > { %v5410_v31 = vadd.f32 %v3560_v24, %v5337_v22  ;;  %v3589_v22 = vld [vmem:[%s5580_s9 + $0x10] sm:$0xff]  ;;  %s5447_s9 = scalar_lea.hbm %s5001_s4, %s4028_s2 }
0x209d   : > { %v4543_v0 = vpack.c.bf16 %v3590_v63, %v3589_v22 }
0x209e   : > { %v3564_v55 = vsel %vm1285_vm2, %v5410_v31, 0.0 }
0x209f   : > { %3565 = vadd.xlane.f32.xlu1 %v3564_v55  ;;  %4544 = vmatpush3.bf16.msra.mxu0 %v4543_v0  ;;  %v4023_v55 = vld [vmem:[%s4986_s17] ss:$0 sm:$0xff] }
0x212c   : > { %v3566_v56 = vpop.xlane.xlu1 %3565 }
0x212d   : > { %v3567_v57 = vmul.f32 0.03125, %v3566_v56 }
0x212f   : > { %v3568_v58 = vsub.f32 %v5410_v31, %v3567_v57 }
0x2131   : > { %v3569_v14 = vmul.f32 %v3568_v58, %v3568_v58 }
0x2133   : > { %v3570_v59 = vsel %vm1285_vm2, %v3569_v14, 0.0 }
0x2134   : > { %3571 = vadd.xlane.f32.xlu1 %v3570_v59 }
0x21c1   : > { %v3572_v49 = vpop.xlane.xlu1 %3571 }
0x21c2   : > { %v3573_v1 = vmul.f32 0.03125, %v3572_v49 }
0x21c4   : > { %v3574_v30 = vadd.f32 1e-05, %v3573_v1  ;;  %v4025_v1 = vld [vmem:[%s5547_s6] ss:$0 sm:$0xff] }
0x21c6   : > { %4687 = vrsqrt.f32 %v3574_v30 }
0x21d0   : > { %v4688_v2 = vpop.eup %4687 }
0x21d1   : > { %v3576_v6 = vmul.f32 %v4688_v2, %v3568_v58  ;;  %v4026_v2 = vld [vmem:[%s5547_s6 + $0x1] ss:$0 sm:$0xff]  ;;  %s4701_s6 = scalar_lea.vmem %s4700_s12, 256 }
0x21d2   : > { %p4703_p1 = scmp.lt.s32.totalorder %s4701_s6, %s4695_s14 }
0x21d3   : > { %v3581_v9 = vmul.f32 %v4019_v3, %v3576_v6 }
0x21d4   : > { %p4704_p2 = por %p4703_p1, %p4702_p0 }
0x21d5   : > { %v3586_v10 = vadd.f32 %v4020_v8, %v3581_v9 }
0x21d6   : > { %p4705_p3 = pnand %p4704_p2, %p4698_p13 }
0x21d7   : > { %4410 = vmatmul.mubr.msk.f32.vlgmr.msra.gmra.mrb[18].mxu0 %vm1285_vm2, %v3586_v10 }
0x22aa   : > { %v3667_v39 = vpop.f32.mrb[18].mxu0 }
0x22ab   : > { %v3668_v40 = vadd.f32 %v4021_v38, %v3667_v39  ;;  %v4411_v21 = vpop.f32.mrb[19].mxu0 }
0x22ad   : > { %v3672_v41 = vmul.f32 0.70710677, %v3668_v40  ;;  %v3671_v18 = vmul.f32 0.5, %v3668_v40 }
0x22af   : > { %v3675_v28 = vand.u32 2147483647, %v3672_v41  ;;  %vm3673_vm9 = vcmp.ge.f32.partialorder %v3672_v41, 0.0 }
0x22b0   : > { %v3674_v11 = vsel %vm3673_vm9, 1.0, %v4806_v51 }
0x22b1   : > { %v3676_v42 = vmul.f32 0.3275911, %v3675_v28  ;;  %v3689_v25 = vmul.f32 %v3675_v28, %v3675_v28 }
0x22b3   : > { %v3677_v29 = vadd.f32 1.0, %v3676_v42  ;;  %v3690_v44 = vsub.f32 0.0, %v3689_v25 }
0x22b5   : > { %4689 = vrcp.f32 %v3677_v29  ;;  %v3691_v46 = vmul.f32 1.442695, %v3690_v44 }
0x22b7   : > { %4691 = vpow2.f32 %v3691_v46 }
0x22bf   : > { %v4690_v43 = vpop.eup %4689 }
0x22c0   : > { %v3680_v33 = vmul.f32 1.0614054, %v4690_v43 }
0x22c1   : > { %v4692_v54 = vpop.eup %4691 }
0x22c2   : > { %v3681_v45 = vadd.f32 -1.4531521, %v3680_v33 }
0x22c4   : > { %v3682_v4 = vmul.f32 %v4690_v43, %v3681_v45 }
0x22c6   : > { %v3683_v47 = vadd.f32 1.4214138, %v3682_v4 }
0x22c8   : > { %v3684_v32 = vmul.f32 %v4690_v43, %v3683_v47 }
0x22ca   : > { %v3685_v48 = vadd.f32 -0.28449672, %v3684_v32 }
0x22cc   : > { %v3686_v50 = vmul.f32 %v4690_v43, %v3685_v48 }
0x22ce   : > { %v3687_v52 = vadd.f32 0.2548296, %v3686_v50 }
0x22d0   : > { %v3688_v53 = vmul.f32 %v4690_v43, %v3687_v52 }
0x22d2   : > { %v3693_v5 = vmul.f32 %v4692_v54, %v3688_v53 }
0x22d4   : > { %v3694_v7 = vsub.f32 1.0, %v3693_v5 }
0x22d6   : > { %v3695_v15 = vmul.f32 %v3694_v7, %v3674_v11 }
0x22d8   : > { %v3696_v24 = vadd.f32 1.0, %v3695_v15 }
0x22da   : > { %v3697_v27 = vmul.f32 %v3696_v24, %v3671_v18 }
0x22dc   : > { %4429 = vmatmul.mubr.msk.f32.vlgmr.msra.gmra.mrb[34].mxu1 %vm2071_vm7, %v3697_v27 }
0x23af   : > { %v3782_v56 = vpop.f32.mrb[34].mxu1 }
0x23b0   : > { %v3783_v57 = vadd.f32 %v4023_v55, %v3782_v56  ;;  %v4430_v58 = vpop.f32.mrb[35].mxu1 }
0x23b2   : > { %v3786_v14 = vadd.f32 %v3783_v57, %v5410_v31 }
0x23b4   : > { %v3789_v59 = vsel %vm1285_vm2, %v3786_v14, 0.0 }
0x23b5   : > { %3790 = vadd.xlane.f32.xlu1 %v3789_v59 }
0x2442   : > { %v3791_v60 = vpop.xlane.xlu1 %3790 }
0x2443   : > { %v3792_v51 = vmul.f32 0.03125, %v3791_v60 }
0x2445   : > { %v3793_v61 = vsub.f32 %v3786_v14, %v3792_v51 }
0x2447   : > { %v3794_v62 = vmul.f32 %v3793_v61, %v3793_v61 }
0x2449   : > { %v3795_v22 = vsel %vm1285_vm2, %v3794_v62, 0.0 }
0x244a   : > { %3796 = vadd.xlane.f32.xlu1 %v3795_v22 }
0x24d7   : > { %v3797_v63 = vpop.xlane.xlu1 %3796 }
0x24d8   : > { %v3798_v0 = vmul.f32 0.03125, %v3797_v63 }
0x24da   : > { %v3799_v49 = vadd.f32 1e-05, %v3798_v0 }
0x24dc   : > { %4693 = vrsqrt.f32 %v3799_v49 }
0x24e6   : > { %v4694_v31 = vpop.eup %4693 }
0x24e7   : > { %v3801_v30 = vmul.f32 %v4694_v31, %v3793_v61 }
0x24e9   : > { %v3806_v3 = vmul.f32 %v4025_v1, %v3801_v30 }
0x24eb   : > { %v3811_v6 = vadd.f32 %v4026_v2, %v3806_v3 }
0x24ed   : > { %3812 = vst.msk [vmem:[%s1152_s3] sm:$0xff] %vm1285_vm2, %v3811_v6 }
0x24ee   : > { %4708 = shalt.err (!%p4705_p3)
}
0x24ef   : > { %s4709_s3 = scalar_lea.hbm %s5447_s9, 128  ;;  %s4713_s2 = scalar_lea.hbm %s5001_s4, 256 }
0x24f0   : > { %p4710_p4 = scmp.ne.s32.totalorder %s5447_s9, %s4709_s3  ;;  %p4714_p9 = scmp.lt.u32.totalorder %s5447_s9, %s5001_s4 }
0x24f1   : > { %p4715_p10 = scmp.lt.u32.totalorder %s4713_s2, %s4709_s3  ;;  %p4717_p12 = scmp.lt.u32.totalorder %s4709_s3, %s5447_s9 }
0x24f2   : > { %p4711_p7 = pnand %p4710_p4, %p5041_p5 }
0x24f3   : > { %p4716_p11 = por %p4715_p10, %p4714_p9 }
0x24f4   : > { %p4712_p8 = pneg %p4711_p7 }
0x24f5   : > { %p4718_p0 = por %p4717_p12, %p4716_p11 }
0x24f7   : > { %p4719_p13 = pnand %p4718_p0, %p4712_p8 }
0x24f9   : > { %4722 = shalt.err (!%p4719_p13)
}
0x24fa   : > { %4557 = dma.vmem_to_hbm [thread:$0]  (%p5041_p5), %s5449_s5, 128, %s5447_s9, %s3814_s13  }
0x24fb PF: > { %p4563_p1 = scmp.ge.s32.totalorder %s4757_s15, 2  ;;  %s3839_s14 = sand.u32 1, %s4745_s7  }
0x24fc   : > { %s3840_s6 = scalar_lea.sflag [#allocation3], %s3839_s14 }
0x24fd   : > { %p4560_p2 = pnand %p4563_p1, %p5045_p6 }
0x24ff   : > { %4740 = dma.done.wait (!%p4560_p2), %s3840_s6, 128  }
0x2500   : > { %4742 = vsyncadd (!%p4560_p2), %s3840_s6, 4294967168  ;;  %p85_p3 = scmp.ge.s32.totalorder %s5028_s18, 4   ;;  %s5583_s7 = smov %s4749_s10 }
0x2501   : > { %s5584_s10 = smov %s4753_s11  ;;  %s5585_s11 = smov %s5039_s26 }
0x2502   : > { %s5586_s15 = smov %s5028_s18  ;;  %87 = sbr.rel (!%p85_p3) target bundleno = 76 (0x4c), region = 249 }
0x2509   :  { %3845 = vsyncpa [#allocation3], 1 }
0x250a   :  { %3847 = vsyncpa [#allocation3 + $0x1], 1 }

</bundles_post_ra>
